<compile_context>
chip_gen: v6e
topology: v6e:2x2x1
jax: 0.10.0
libtpu: 0.0.40
codegen_flags: <defaults>
</compile_context>

<pallas_src>
import functools

import jax
import jax.numpy as jnp
from jax.experimental import pallas as pl
from jax.experimental.pallas import tpu as pltpu

# Module hyper-parameters (consistent with the PyTorch __init__).
MAX_TIME_STEP = 8      # input_dim[1]  (T)
MAX_WORD_LEN = 16      # input_dim[2]  (W)
EMBEDDING_DIM = 8      # E
OUTPUT_DIM = 26        # number of actions
VOCAB = 28             # nn.Embedding(28, E)

HID1 = 128             # common_fc first hidden
HID2 = 256             # common_fc second hidden
STREAM_HID = 128       # value / advantage stream hidden

OUT_PAD = 128          # lane-dense padded output width
VALUE_LANE = OUT_PAD - 1   # lane holding the V(s) scalar in the fused head


def _dueling_kernel(B, T,
                    x_ref,                       # (T*B, W*E)  f32, rows t-major
                    w1_ref, b1_ref,              # (W*E,128) bf16, (1,128) f32
                    w2_ref, b2_ref,              # (128,256) bf16, (1,256) f32
                    ws_ref, bs_ref,              # (T*256,256) bf16 = wv1|wa1, (1,256) f32
                    wh_ref, bh_ref,              # (256,128) bf16 fused head,  (1,128) f32
                    out_ref,                     # (B, 128) f32 (lanes 0..25 = Q)
                    feats_ref):                  # scratch: (B, T*256) bf16
    # ---- common_fc: Linear -> ReLU -> (Dropout=id) -> Linear -> ReLU -> (Dropout=id)
    x = x_ref[...].astype(jnp.bfloat16)
    h1 = jnp.dot(x, w1_ref[...], preferred_element_type=jnp.float32) + b1_ref[...]
    h1 = jnp.maximum(h1, 0.0)
    h2 = jnp.dot(h1.astype(jnp.bfloat16), w2_ref[...],
                 preferred_element_type=jnp.float32) + b2_ref[...]
    h2 = jnp.maximum(h2, 0.0).astype(jnp.bfloat16)          # (T*B, 256), rows t-major

    # ---- features.view(B, -1): write each timestep's (B,256) slab into lanes
    #      [t*256, (t+1)*256) of the feats scratch (no cross-lane relayout).
    for t in range(T):
        feats_ref[:, t * HID2:(t + 1) * HID2] = h2[t * B:(t + 1) * B, :]

    feats = feats_ref[...]                                  # (B, T*256) bf16

    # ---- fused value|advantage stream, layer 1: one K=2048, N=256 matmul
    hidden = jnp.dot(feats, ws_ref[...],
                     preferred_element_type=jnp.float32) + bs_ref[...]
    hidden = jnp.maximum(hidden, 0.0).astype(jnp.bfloat16)  # (B, 256)

    # ---- fused head: raw[:, :26] = advantages, raw[:, VALUE_LANE] = value
    raw = jnp.dot(hidden, wh_ref[...],
                  preferred_element_type=jnp.float32) + bh_ref[...]   # (B, 128)

    lanes = jax.lax.broadcasted_iota(jnp.int32, raw.shape, 1)
    adv_mask = lanes < OUTPUT_DIM
    # global mean over ALL (B, A) advantage entries, like torch `.mean()`
    adv_mean = jnp.sum(jnp.where(adv_mask, raw, 0.0)) * (1.0 / (B * OUTPUT_DIM))
    values = raw[:, VALUE_LANE:VALUE_LANE + 1]              # (B, 1)

    q = values + raw - adv_mean
    out_ref[...] = jnp.where(adv_mask, q, 0.0)


def pack_params(p):
    """Fuse / pad / bf16-cast the raw parameters for the kernel."""
    # fused stream layer 1: columns [0:128] = value stream, [128:256] = advantage
    ws = jnp.concatenate([p["wv1"], p["wa1"]], axis=1)              # (T*256, 256)
    bs = jnp.concatenate([p["bv1"], p["ba1"]], axis=1)              # (1, 256)

    # fused head: block structured, lane-dense 128-wide output
    wh = jnp.zeros((2 * STREAM_HID, OUT_PAD), jnp.float32)
    wh = wh.at[STREAM_HID:, :OUTPUT_DIM].set(p["wa2"])              # advantages
    wh = wh.at[:STREAM_HID, VALUE_LANE].set(p["wv2"][:, 0])         # value
    bh = jnp.zeros((1, OUT_PAD), jnp.float32)
    bh = bh.at[0, :OUTPUT_DIM].set(p["ba2"][0])
    bh = bh.at[0, VALUE_LANE].set(p["bv2"][0, 0])

    bf = jnp.bfloat16
    return dict(
        embedding=p["embedding"],
        w1=p["w1"].astype(bf), b1=p["b1"],
        w2=p["w2"].astype(bf), b2=p["b2"],
        ws=ws.astype(bf), bs=bs,
        wh=wh.astype(bf), bh=bh,
    )


def fc_dueling_dqn_forward(state, packed):
    """state: int32 (B, 1, T, W) indices in [0, VOCAB)."""
    B, _, T, W = state.shape
    E = packed["embedding"].shape[1]

    # ---- glue: squeeze + embedding gather, rows ordered t-major ----
    idx = jnp.transpose(jnp.squeeze(state, axis=1), (1, 0, 2))      # (T, B, W)
    emb = jnp.take(packed["embedding"], idx, axis=0)                # (T, B, W, E)
    x = emb.reshape(T * B, W * E).astype(jnp.float32)               # (T*B, W*E)

    operands = (
        x,
        packed["w1"], packed["b1"],
        packed["w2"], packed["b2"],
        packed["ws"], packed["bs"],
        packed["wh"], packed["bh"],
    )

    flops = (2 * (T * B) * (W * E) * HID1
             + 2 * (T * B) * HID1 * HID2
             + 2 * B * (T * HID2) * (2 * STREAM_HID)
             + 2 * B * (2 * STREAM_HID) * OUT_PAD)
    bytes_accessed = int(sum(int(o.size) * o.dtype.itemsize for o in operands)
                         + B * OUT_PAD * 4)

    kernel = functools.partial(_dueling_kernel, B, T)
    vmem_spec = pl.BlockSpec(memory_space=pltpu.MemorySpace.VMEM)

    out = pl.pallas_call(
        kernel,
        out_shape=jax.ShapeDtypeStruct((B, OUT_PAD), jnp.float32),
        in_specs=[vmem_spec] * len(operands),
        out_specs=vmem_spec,
        scratch_shapes=[pltpu.VMEM((B, T * HID2), jnp.bfloat16)],
        cost_estimate=pl.CostEstimate(
            flops=flops, transcendentals=0, bytes_accessed=bytes_accessed),
    )(*operands)

    return out[:, :OUTPUT_DIM]


def _linear_init(key, fan_in, fan_out):
    """Deterministic stand-in for PyTorch nn.Linear default init."""
    kw, kb = jax.random.split(key)
    bound = 1.0 / jnp.sqrt(float(fan_in))
    w = jax.random.uniform(kw, (fan_in, fan_out), jnp.float32, -bound, bound)
    b = jax.random.uniform(kb, (1, fan_out), jnp.float32, -bound, bound)
    return w, b


def init_params(key):
    keys = jax.random.split(key, 7)
    emb = jax.random.normal(keys[0], (VOCAB, EMBEDDING_DIM), jnp.float32)

    w1, b1 = _linear_init(keys[1], MAX_WORD_LEN * EMBEDDING_DIM, HID1)
    w2, b2 = _linear_init(keys[2], HID1, HID2)
    wv1, bv1 = _linear_init(keys[3], HID2 * MAX_TIME_STEP, STREAM_HID)
    wv2, bv2 = _linear_init(keys[4], STREAM_HID, 1)
    wa1, ba1 = _linear_init(keys[5], HID2 * MAX_TIME_STEP, STREAM_HID)
    wa2, ba2 = _linear_init(keys[6], STREAM_HID, OUTPUT_DIM)

    return dict(embedding=emb,
                w1=w1, b1=b1, w2=w2, b2=b2,
                wv1=wv1, bv1=bv1, wv2=wv2, bv2=bv2,
                wa1=wa1, ba1=ba1, wa2=wa2, ba2=ba2)


def reference_forward(state, p):
    """Pure-JAX f32 reference matching the PyTorch module."""
    B, _, T, W = state.shape
    idx = jnp.squeeze(state, axis=1)
    x = jnp.take(p["embedding"], idx, axis=0).reshape(B, T, -1)
    h1 = jax.nn.relu(x @ p["w1"] + p["b1"])
    h2 = jax.nn.relu(h1 @ p["w2"] + p["b2"])
    feats = h2.reshape(B, -1)
    v = jax.nn.relu(feats @ p["wv1"] + p["bv1"]) @ p["wv2"] + p["bv2"]
    a = jax.nn.relu(feats @ p["wa1"] + p["ba1"]) @ p["wa2"] + p["ba2"]
    return v + (a - jnp.mean(a))


if __name__ == "__main__":
    key = jax.random.PRNGKey(0)
    pkey, skey = jax.random.split(key)

    params = init_params(pkey)
    packed = pack_params(params)

    B = 2
    state = jax.random.randint(
        skey, (B, 1, MAX_TIME_STEP, MAX_WORD_LEN), 0, VOCAB, dtype=jnp.int32)

    q = fc_dueling_dqn_forward(state, packed)
    q = jax.block_until_ready(q)

    q_ref = reference_forward(state, params)
    assert q.shape == (B, OUTPUT_DIM)
    # bf16 weights in the kernel vs f32 reference -> loosened tolerance.
    assert jnp.allclose(q, q_ref, atol=5e-2, rtol=5e-2), "mismatch vs reference"

    print("KERNEL_OK")
</pallas_src>

<mosaic_0001>
module attributes {stable_mosaic.version = 11 : i64} {
  func.func @_dueling_kernel(%arg0: memref<16x128xf32, #tpu.memory_space<vmem>>, %arg1: memref<128x128xbf16, #tpu.memory_space<vmem>>, %arg2: memref<1x128xf32, #tpu.memory_space<vmem>>, %arg3: memref<128x256xbf16, #tpu.memory_space<vmem>>, %arg4: memref<1x256xf32, #tpu.memory_space<vmem>>, %arg5: memref<2048x256xbf16, #tpu.memory_space<vmem>>, %arg6: memref<1x256xf32, #tpu.memory_space<vmem>>, %arg7: memref<256x128xbf16, #tpu.memory_space<vmem>>, %arg8: memref<1x128xf32, #tpu.memory_space<vmem>>, %arg9: memref<2x128xf32, #tpu.memory_space<vmem>>, %arg10: memref<2x2048xbf16, #tpu.memory_space<vmem>>) attributes {dimension_semantics = [], scalar_prefetch = 0 : i64, scratch_operands = 1 : i64, tpu.core_type = #tpu.core_type<tc>} {
    %c0 = arith.constant 0 : index
    %c0_0 = arith.constant 0 : index
    %0 = vector.load %arg0[%c0, %c0_0] : memref<16x128xf32, #tpu.memory_space<vmem>>, vector<16x128xf32>
    %1 = arith.truncf %0 : vector<16x128xf32> to vector<16x128xbf16>
    %c0_1 = arith.constant 0 : index
    %c0_2 = arith.constant 0 : index
    %2 = vector.load %arg1[%c0_1, %c0_2] : memref<128x128xbf16, #tpu.memory_space<vmem>>, vector<128x128xbf16>
    %cst = arith.constant dense<0.000000e+00> : vector<16x128xf32>
    %3 = tpu.matmul %1, %2, %cst {dimension_numbers = #tpu.dot_dimension_numbers<[1], [0], [0], [1], [0, 0, 1, 1], [], []>} : vector<16x128xbf16>, vector<128x128xbf16>, vector<16x128xf32> -> vector<16x128xf32>
    %c0_3 = arith.constant 0 : index
    %c0_4 = arith.constant 0 : index
    %4 = vector.load %arg2[%c0_3, %c0_4] : memref<1x128xf32, #tpu.memory_space<vmem>>, vector<1x128xf32>
    %5 = vector.broadcast %4 : vector<1x128xf32> to vector<16x128xf32>
    %6 = arith.addf %3, %5 : vector<16x128xf32>
    %cst_5 = arith.constant 0.000000e+00 : f32
    %7 = vector.broadcast %cst_5 : f32 to vector<16x128xf32>
    %8 = arith.maximumf %6, %7 : vector<16x128xf32>
    %9 = arith.truncf %8 : vector<16x128xf32> to vector<16x128xbf16>
    %c0_6 = arith.constant 0 : index
    %c0_7 = arith.constant 0 : index
    %10 = vector.load %arg3[%c0_6, %c0_7] : memref<128x256xbf16, #tpu.memory_space<vmem>>, vector<128x256xbf16>
    %cst_8 = arith.constant dense<0.000000e+00> : vector<16x256xf32>
    %11 = tpu.matmul %9, %10, %cst_8 {dimension_numbers = #tpu.dot_dimension_numbers<[1], [0], [0], [1], [0, 0, 1, 1], [], []>} : vector<16x128xbf16>, vector<128x256xbf16>, vector<16x256xf32> -> vector<16x256xf32>
    %c0_9 = arith.constant 0 : index
    %c0_10 = arith.constant 0 : index
    %12 = vector.load %arg4[%c0_9, %c0_10] : memref<1x256xf32, #tpu.memory_space<vmem>>, vector<1x256xf32>
    %13 = vector.broadcast %12 : vector<1x256xf32> to vector<16x256xf32>
    %14 = arith.addf %11, %13 : vector<16x256xf32>
    %cst_11 = arith.constant 0.000000e+00 : f32
    %15 = vector.broadcast %cst_11 : f32 to vector<16x256xf32>
    %16 = arith.maximumf %14, %15 : vector<16x256xf32>
    %17 = arith.truncf %16 : vector<16x256xf32> to vector<16x256xbf16>
    %18 = vector.extract_strided_slice %17 {offsets = [0, 0], sizes = [2, 256], strides = [1, 1]} : vector<16x256xbf16> to vector<2x256xbf16>
    %c0_12 = arith.constant 0 : index
    %c0_13 = arith.constant 0 : index
    %19 = vector.load %arg10[%c0_12, %c0_13] : memref<2x2048xbf16, #tpu.memory_space<vmem>>, vector<2x256xbf16>
    tpu.vector_store %arg10[%c0_12, %c0_13], %18 {strides = array<i32>} : memref<2x2048xbf16, #tpu.memory_space<vmem>>, vector<2x256xbf16>,
    %20 = vector.extract_strided_slice %17 {offsets = [2, 0], sizes = [2, 256], strides = [1, 1]} : vector<16x256xbf16> to vector<2x256xbf16>
    %c0_14 = arith.constant 0 : index
    %c256 = arith.constant 256 : index
    %21 = vector.load %arg10[%c0_14, %c256] : memref<2x2048xbf16, #tpu.memory_space<vmem>>, vector<2x256xbf16>
    tpu.vector_store %arg10[%c0_14, %c256], %20 {strides = array<i32>} : memref<2x2048xbf16, #tpu.memory_space<vmem>>, vector<2x256xbf16>,
    %22 = vector.extract_strided_slice %17 {offsets = [4, 0], sizes = [2, 256], strides = [1, 1]} : vector<16x256xbf16> to vector<2x256xbf16>
    %c0_15 = arith.constant 0 : index
    %c512 = arith.constant 512 : index
    %23 = vector.load %arg10[%c0_15, %c512] : memref<2x2048xbf16, #tpu.memory_space<vmem>>, vector<2x256xbf16>
    tpu.vector_store %arg10[%c0_15, %c512], %22 {strides = array<i32>} : memref<2x2048xbf16, #tpu.memory_space<vmem>>, vector<2x256xbf16>,
    %24 = vector.extract_strided_slice %17 {offsets = [6, 0], sizes = [2, 256], strides = [1, 1]} : vector<16x256xbf16> to vector<2x256xbf16>
    %c0_16 = arith.constant 0 : index
    %c768 = arith.constant 768 : index
    %25 = vector.load %arg10[%c0_16, %c768] : memref<2x2048xbf16, #tpu.memory_space<vmem>>, vector<2x256xbf16>
    tpu.vector_store %arg10[%c0_16, %c768], %24 {strides = array<i32>} : memref<2x2048xbf16, #tpu.memory_space<vmem>>, vector<2x256xbf16>,
    %26 = vector.extract_strided_slice %17 {offsets = [8, 0], sizes = [2, 256], strides = [1, 1]} : vector<16x256xbf16> to vector<2x256xbf16>
    %c0_17 = arith.constant 0 : index
    %c1024 = arith.constant 1024 : index
    %27 = vector.load %arg10[%c0_17, %c1024] : memref<2x2048xbf16, #tpu.memory_space<vmem>>, vector<2x256xbf16>
    tpu.vector_store %arg10[%c0_17, %c1024], %26 {strides = array<i32>} : memref<2x2048xbf16, #tpu.memory_space<vmem>>, vector<2x256xbf16>,
    %28 = vector.extract_strided_slice %17 {offsets = [10, 0], sizes = [2, 256], strides = [1, 1]} : vector<16x256xbf16> to vector<2x256xbf16>
    %c0_18 = arith.constant 0 : index
    %c1280 = arith.constant 1280 : index
    %29 = vector.load %arg10[%c0_18, %c1280] : memref<2x2048xbf16, #tpu.memory_space<vmem>>, vector<2x256xbf16>
    tpu.vector_store %arg10[%c0_18, %c1280], %28 {strides = array<i32>} : memref<2x2048xbf16, #tpu.memory_space<vmem>>, vector<2x256xbf16>,
    %30 = vector.extract_strided_slice %17 {offsets = [12, 0], sizes = [2, 256], strides = [1, 1]} : vector<16x256xbf16> to vector<2x256xbf16>
    %c0_19 = arith.constant 0 : index
    %c1536 = arith.constant 1536 : index
    %31 = vector.load %arg10[%c0_19, %c1536] : memref<2x2048xbf16, #tpu.memory_space<vmem>>, vector<2x256xbf16>
    tpu.vector_store %arg10[%c0_19, %c1536], %30 {strides = array<i32>} : memref<2x2048xbf16, #tpu.memory_space<vmem>>, vector<2x256xbf16>,
    %32 = vector.extract_strided_slice %17 {offsets = [14, 0], sizes = [2, 256], strides = [1, 1]} : vector<16x256xbf16> to vector<2x256xbf16>
    %c0_20 = arith.constant 0 : index
    %c1792 = arith.constant 1792 : index
    %33 = vector.load %arg10[%c0_20, %c1792] : memref<2x2048xbf16, #tpu.memory_space<vmem>>, vector<2x256xbf16>
    tpu.vector_store %arg10[%c0_20, %c1792], %32 {strides = array<i32>} : memref<2x2048xbf16, #tpu.memory_space<vmem>>, vector<2x256xbf16>,
    %c0_21 = arith.constant 0 : index
    %c0_22 = arith.constant 0 : index
    %34 = vector.load %arg10[%c0_21, %c0_22] : memref<2x2048xbf16, #tpu.memory_space<vmem>>, vector<2x2048xbf16>
    %c0_23 = arith.constant 0 : index
    %c0_24 = arith.constant 0 : index
    %35 = vector.load %arg5[%c0_23, %c0_24] : memref<2048x256xbf16, #tpu.memory_space<vmem>>, vector<2048x256xbf16>
    %cst_25 = arith.constant dense<0.000000e+00> : vector<2x256xf32>
    %36 = tpu.matmul %34, %35, %cst_25 {dimension_numbers = #tpu.dot_dimension_numbers<[1], [0], [0], [1], [0, 0, 1, 1], [], []>} : vector<2x2048xbf16>, vector<2048x256xbf16>, vector<2x256xf32> -> vector<2x256xf32>
    %c0_26 = arith.constant 0 : index
    %c0_27 = arith.constant 0 : index
    %37 = vector.load %arg6[%c0_26, %c0_27] : memref<1x256xf32, #tpu.memory_space<vmem>>, vector<1x256xf32>
    %38 = vector.broadcast %37 : vector<1x256xf32> to vector<2x256xf32>
    %39 = arith.addf %36, %38 : vector<2x256xf32>
    %cst_28 = arith.constant 0.000000e+00 : f32
    %40 = vector.broadcast %cst_28 : f32 to vector<2x256xf32>
    %41 = arith.maximumf %39, %40 : vector<2x256xf32>
    %42 = arith.truncf %41 : vector<2x256xf32> to vector<2x256xbf16>
    %c0_29 = arith.constant 0 : index
    %c0_30 = arith.constant 0 : index
    %43 = vector.load %arg7[%c0_29, %c0_30] : memref<256x128xbf16, #tpu.memory_space<vmem>>, vector<256x128xbf16>
    %cst_31 = arith.constant dense<0.000000e+00> : vector<2x128xf32>
    %44 = tpu.matmul %42, %43, %cst_31 {dimension_numbers = #tpu.dot_dimension_numbers<[1], [0], [0], [1], [0, 0, 1, 1], [], []>} : vector<2x256xbf16>, vector<256x128xbf16>, vector<2x128xf32> -> vector<2x128xf32>
    %c0_32 = arith.constant 0 : index
    %c0_33 = arith.constant 0 : index
    %45 = vector.load %arg8[%c0_32, %c0_33] : memref<1x128xf32, #tpu.memory_space<vmem>>, vector<1x128xf32>
    %46 = vector.broadcast %45 : vector<1x128xf32> to vector<2x128xf32>
    %47 = arith.addf %44, %46 : vector<2x128xf32>
    %48 = tpu.iota {dimensions = array<i32: 1>} : vector<2x128xi32>
    %c26_i32 = arith.constant 26 : i32
    %49 = vector.broadcast %c26_i32 : i32 to vector<2x128xi32>
    %50 = arith.cmpi slt, %48, %49 : vector<2x128xi32>
    %cst_34 = arith.constant 0.000000e+00 : f32
    %51 = vector.broadcast %cst_34 : f32 to vector<2x128xf32>
    %52 = arith.select %50, %47, %51 : vector<2x128xi1>, vector<2x128xf32>
    %53 = vector.shape_cast %52 : vector<2x128xf32> to vector<1x2x128xf32>
    %cst_35 = arith.constant dense<0.000000e+00> : vector<1xf32>
    %54 = vector.multi_reduction <add>, %53, %cst_35 [1, 2] : vector<1x2x128xf32> to vector<1xf32>
    %55 = vector.shape_cast %54 : vector<1xf32> to vector<1x1x1xf32>
    %56 = vector.extract %55[0, 0, 0] : f32 from vector<1x1x1xf32>
    %cst_36 = arith.constant 0.0192307699 : f32
    %57 = arith.mulf %56, %cst_36 : f32
    %58 = vector.extract_strided_slice %47 {offsets = [0, 127], sizes = [2, 1], strides = [1, 1]} : vector<2x128xf32> to vector<2x1xf32>
    %59 = vector.broadcast %58 : vector<2x1xf32> to vector<2x128xf32>
    %60 = arith.addf %59, %47 : vector<2x128xf32>
    %61 = vector.broadcast %57 : f32 to vector<2x128xf32>
    %62 = arith.subf %60, %61 : vector<2x128xf32>
    %cst_37 = arith.constant 0.000000e+00 : f32
    %63 = vector.broadcast %cst_37 : f32 to vector<2x128xf32>
    %64 = arith.select %50, %62, %63 : vector<2x128xi1>, vector<2x128xf32>
    %c0_38 = arith.constant 0 : index
    %c0_39 = arith.constant 0 : index
    %65 = vector.load %arg9[%c0_38, %c0_39] : memref<2x128xf32, #tpu.memory_space<vmem>>, vector<2x128xf32>
    tpu.vector_store %arg9[%c0_38, %c0_39], %64 {strides = array<i32>} : memref<2x128xf32, #tpu.memory_space<vmem>>, vector<2x128xf32>,
    return
  }
}

</mosaic_0001>

<bundles_post_ra>
// kernel: tpu_custom_call.1
= control target key start
LH: loop header
LB: loop body
LE: loop exit
PB: predicated region body
PF: predicated region fallthrough
CT: control target
= control target key end

     0   :  { %14 = vsyncpa [#allocation4], 0  ;;  %s3759_s0 = inlined_call_operand.hbm [shape: f32[16,128], index: 0, kind: input, shape index: {}]   ;;  %s3760_s1 = inlined_call_operand.hbm [shape: bf16[128,128], index: 1, kind: input, shape index: {}]   ;;  %s3761_s2 = inlined_call_operand.vmem [shape: f32[1,128], index: 2, kind: input, shape index: {}]   ;;  %s3762_s3 = inlined_call_operand.hbm [shape: bf16[128,256], index: 3, kind: input, shape index: {}]   ;;  %s3763_s4 = inlined_call_operand.vmem [shape: f32[1,256], index: 4, kind: input, shape index: {}]   ;;  %s3764_s5 = inlined_call_operand.hbm [shape: bf16[2048,256], index: 5, kind: input, shape index: {}]   ;;  %s3765_s6 = inlined_call_operand.vmem [shape: f32[1,256], index: 6, kind: input, shape index: {}]   ;;  %s3766_s7 = inlined_call_operand.hbm [shape: bf16[256,128], index: 7, kind: input, shape index: {}]   ;;  %s3767_s8 = inlined_call_operand.vmem [shape: f32[1,128], index: 8, kind: input, shape index: {}]   ;;  %s3768_s9 = inlined_call_operand.hbm [shape: f32[2,128], index: 9, kind: output, shape index: {}]  }
   0x1   :  { %15 = vsyncpa [#allocation7], 0 }
   0x2   :  { %16 = vsyncpa [#allocation10], 0 }
   0x3   :  { %17 = vsyncpa [#allocation5], 0  ;;  %s3596_s30 = smov [#allocation6]  }
   0x4   :  { %s35_s10 = sshll.u32 %s3596_s30, 4  ;;  %s36_s10 = int_to_ptr.vmem [resolvable:$true] %s35_s10 }
   0x5   :  { %s3476_s11 = scalar_lea.vmem %s36_s10, 1024  ;;  %p3481_p1 = scmp.lt.s32.totalorder %s36_s10, %s36_s10 }
   0x6   :  { %p3477_p0 = scmp.ne.s32.totalorder %s36_s10, %s3476_s11  ;;  %p3482_p2 = scmp.lt.s32.totalorder %s3476_s11, %s3476_s11 }
   0x8   :  { %p3483_p3 = por %p3482_p2, %p3481_p1 }
   0xa   :  { %p3484_p4 = pnand %p3483_p3, %p3477_p0 }
   0xc   :  { %3487 = shalt.err (!%p3484_p4)
}
   0xd   :  { %s3597_s12 = smov 64   ;;  %s3598_s13 = smov 4  }
   0xe   :  { %41 = dma.hbm_to_vmem [thread:$0]  %s3760_s1, 1024, %s36_s10, [#allocation7], %s3597_s12, %s3597_s12, %s3598_s13  }
   0xf   :  { %s3599_s16 = smov [#allocation9]   ;;  %s3600_s18 = smov [#allocation3]  }
  0x10   :  { %s63_s17 = sshll.u32 %s3599_s16, 4  ;;  %s23_s19 = sshll.u32 %s3600_s18, 4  ;;  %s64_s17 = int_to_ptr.vmem [resolvable:$true] %s63_s17  ;;  %s24_s19 = int_to_ptr.vmem [resolvable:$true] %s23_s19 }
  0x11   :  { %s3496_s20 = scalar_lea.vmem %s64_s17, 32768  ;;  %p3501_p6 = scmp.lt.s32.totalorder %s64_s17, %s64_s17 }
  0x12   :  { %p3497_p5 = scmp.ne.s32.totalorder %s64_s17, %s3496_s20  ;;  %p3502_p7 = scmp.lt.s32.totalorder %s3496_s20, %s3496_s20 }
  0x14   :  { %p3503_p8 = por %p3502_p7, %p3501_p6 }
  0x16   :  { %p3504_p9 = pnand %p3503_p8, %p3497_p5 }
  0x18   :  { %3507 = shalt.err (!%p3504_p9)
}
  0x19   :  { %s3601_s21 = smov 128   ;;  %s3602_s22 = smov 8  }
  0x1a   :  { %69 = dma.hbm_to_vmem [thread:$0]  %s3764_s5, 32768, %s64_s17, [#allocation10], %s3601_s21, %s3601_s21, %s3602_s22  }
  0x1b   :  { %s3516_s1 = scalar_lea.vmem %s24_s19, 256  ;;  %p3521_p11 = scmp.lt.s32.totalorder %s24_s19, %s24_s19 }
  0x1c   :  { %p3517_p10 = scmp.ne.s32.totalorder %s24_s19, %s3516_s1  ;;  %p3522_p12 = scmp.lt.s32.totalorder %s3516_s1, %s3516_s1 }
  0x1e   :  { %p3523_p13 = por %p3522_p12, %p3521_p11 }
  0x20   :  { %p3524_p0 = pnand %p3523_p13, %p3517_p10 }
  0x22   :  { %3527 = shalt.err (!%p3524_p0)
}
  0x23   :  { %29 = dma.hbm_to_vmem [thread:$0]  %s3759_s0, 256, %s24_s19, [#allocation4], %s3601_s21, %s3601_s21, %s3602_s22  }
  0x24   :  { %s3603_s27 = smov [#allocation8]   ;;  %s3604_s29 = smov [#allocation11]  }
  0x25   :  { %s49_s28 = sshll.u32 %s3603_s27, 4  ;;  %s77_s30 = sshll.u32 %s3604_s29, 4  ;;  %s50_s28 = int_to_ptr.vmem [resolvable:$true] %s49_s28  ;;  %s78_s30 = int_to_ptr.vmem [resolvable:$true] %s77_s30 }
  0x26   :  { %s3536_s10 = scalar_lea.vmem %s50_s28, 2048  ;;  %p3541_p2 = scmp.lt.s32.totalorder %s50_s28, %s50_s28 }
  0x27   :  { %p3537_p1 = scmp.ne.s32.totalorder %s50_s28, %s3536_s10  ;;  %p3542_p3 = scmp.lt.s32.totalorder %s3536_s10, %s3536_s10 }
  0x29   :  { %p3543_p4 = por %p3542_p3, %p3541_p2 }
  0x2b   :  { %p3544_p5 = pnand %p3543_p4, %p3537_p1 }
  0x2d   :  { %3547 = shalt.err (!%p3544_p5)
}
  0x2e   :  { %55 = dma.hbm_to_vmem [thread:$0]  %s3762_s3, 2048, %s50_s28, [#allocation7], %s3601_s21, %s3601_s21, %s3602_s22  }
  0x2f   :  { %s3556_s14 = scalar_lea.vmem %s78_s30, 2048  ;;  %p3561_p7 = scmp.lt.s32.totalorder %s78_s30, %s78_s30 }
  0x30   :  { %p3557_p6 = scmp.ne.s32.totalorder %s78_s30, %s3556_s14  ;;  %p3562_p8 = scmp.lt.s32.totalorder %s3556_s14, %s3556_s14 }
  0x32   :  { %p3563_p9 = por %p3562_p8, %p3561_p7 }
  0x34   :  { %p3564_p10 = pnand %p3563_p9, %p3557_p6 }
  0x36   :  { %3567 = shalt.err (!%p3564_p10)
}
  0x37   :  { %83 = dma.hbm_to_vmem [thread:$0]  %s3766_s7, 2048, %s78_s30, [#allocation10], %s3597_s12, %s3597_s12, %s3598_s13  }
  0x38   :  { %3588 = dma.done.wait [#allocation4], 256  }
  0x39   :  { %3589 = vsyncadd [#allocation4], 4294967040 }
  0x3a   :  { %3590 = dma.done.wait [#allocation7], 3072  }
  0x3b   :  { %3591 = vsyncadd [#allocation7], 4294964224 }
  0x3c   :  { %3592 = dma.done.wait [#allocation10], 34816  }
  0x3d   :  { %3593 = vsyncadd [#allocation10], 4294932480  ;;  %v3605_v0 = vmov 0.0   ;;  %vm3606_vm0 = vmmov 0   ;;  %v3034_v1 = vld [vmem:[#allocation6 + $0x38] sm:$0xff]   ;;  %v3035_v2 = vld [vmem:[#allocation6 + $0x30] sm:$0xff]  }
  0x3e   :  { %2996 = vmatprep.subr.bf16.mxu0 %v3605_v0  ;;  %3012 = vmatprep.mubr.msk.bf16.mxu0 %vm3606_vm0, %v3605_v0  ;;  %v3036_v3 = vld [vmem:[#allocation6 + $0x28] sm:$0xff]   ;;  %v3037_v4 = vld [vmem:[#allocation6 + $0x20] sm:$0xff]   ;;  %v3042_v5 = vld [vmem:[#allocation8 + $0x74] ss:$8 sps:$4 sm:$0xff]   ;;  %v3607_v28 = vmov 0   ;;  %vm2622_vm2 = vcmask 1041408  }
  0x3f   :  { %2997 = vmatpush3.bf16.msra.mxu0 %v3034_v1  ;;  %v3044_v6 = vld [vmem:[#allocation8 + $0x70] ss:$8 sps:$4 sm:$0xff]   ;;  %v3045_v7 = vld [vmem:[#allocation8 + $0x64] ss:$8 sps:$4 sm:$0xff]   ;;  %328 = vmatprep.subr.bf16.mxu1 %v3042_v5  ;;  %v3047_v8 = vld [vmem:[#allocation8 + $0x60] ss:$8 sps:$4 sm:$0xff]  }
  0x40   :  { %2998 = vmatprep.subr.bf16.mxu0 %v3605_v0  ;;  %329 = vmatpush1.bf16.msra.mxu1 %v3044_v6  ;;  %v3048_v9 = vld [vmem:[#allocation8 + $0x54] ss:$8 sps:$4 sm:$0xff]   ;;  %v3050_v12 = vld [vmem:[#allocation8 + $0x50] ss:$8 sps:$4 sm:$0xff]   ;;  %v3051_v13 = vld [vmem:[#allocation8 + $0x44] ss:$8 sps:$4 sm:$0xff]  }
  0x41   :  { %330 = vmatprep.subr.bf16.mxu1 %v3045_v7  ;;  %v3038_v10 = vld [vmem:[#allocation6 + $0x18] sm:$0xff]   ;;  %v3039_v11 = vld [vmem:[#allocation6 + $0x10] sm:$0xff]   ;;  %v3053_v14 = vld [vmem:[#allocation8 + $0x40] ss:$8 sps:$4 sm:$0xff]   ;;  %360 = vmatprep.mubr.bf16.mxu1 %v3607_v28  ;;  %s3610_s18 = smov [#allocation12]  }
  0x42   :  { %v3054_v15 = vld [vmem:[#allocation8 + $0x34] ss:$8 sps:$4 sm:$0xff]   ;;  %v3040_v16 = vld [vmem:[#allocation6 + $0x8] sm:$0xff]   ;;  %v3056_v17 = vld [vmem:[#allocation8 + $0x30] ss:$8 sps:$4 sm:$0xff]   ;;  %s2650_s19 = sshll.u32 %s3610_s18, 4  ;;  %s2651_s19 = int_to_ptr.vmem [resolvable:$true] %s2650_s19 }
  0x43   :  { %2999 = vmatpush3.bf16.msra.mxu0 %v3035_v2  ;;  %v3057_v18 = vld [vmem:[#allocation8 + $0x24] ss:$8 sps:$4 sm:$0xff]   ;;  %v102_v20 = vld [vmem:[#allocation3] sm:$0xff]  ;;  %v103_v21 = vld [vmem:[#allocation3 + $0x8] sm:$0xff]  ;;  %s3568_s20 = scalar_lea.vmem %s2651_s19, 32  ;;  %p3573_p12 = scmp.lt.s32.totalorder %s2651_s19, %s2651_s19 }
  0x44   :  { %3000 = vmatprep.subr.bf16.mxu0 %v3605_v0  ;;  %331 = vmatpush1.bf16.msra.mxu1 %v3047_v8  ;;  %v3041_v19 = vld [vmem:[#allocation6] sm:$0xff]   ;;  %v104_v22 = vpack.c.bf16 %v103_v21, %v102_v20  ;;  %v3060_v24 = vld [vmem:[#allocation8 + $0x14] ss:$8 sps:$4 sm:$0xff]   ;;  %v3062_v25 = vld [vmem:[#allocation8 + $0x10] ss:$8 sps:$4 sm:$0xff]   ;;  %p3569_p11 = scmp.ne.s32.totalorder %s2651_s19, %s3568_s20  ;;  %p3574_p13 = scmp.lt.s32.totalorder %s3568_s20, %s3568_s20 }
  0x45   :  { %332 = vmatprep.subr.bf16.mxu1 %v3048_v9  ;;  %v3059_v23 = vld [vmem:[#allocation8 + $0x20] ss:$8 sps:$4 sm:$0xff]   ;;  %v3063_v26 = vld [vmem:[#allocation8 + $0x4] ss:$8 sps:$4 sm:$0xff]   ;;  %v3066_v29 = vld [vmem:[#allocation9 + $0x70] ss:$8 sps:$4 sm:$0xff]  }
  0x46   :  { %v3065_v27 = vld [vmem:[#allocation8] ss:$8 sps:$4 sm:$0xff]   ;;  %v3068_v30 = vld [vmem:[#allocation9 + $0x74] ss:$8 sps:$4 sm:$0xff]   ;;  %v3074_v32 = vld [vmem:[#allocation9 + $0x64] ss:$8 sps:$4 sm:$0xff]   ;;  %p3575_p0 = por %p3574_p13, %p3573_p12 }
  0x47   :  { %3001 = vmatpush3.bf16.msra.mxu0 %v3036_v3  ;;  %v3071_v31 = vld [vmem:[#allocation9 + $0x174] ss:$8 sps:$4 sm:$0xff]   ;;  %v3072_v33 = vld [vmem:[#allocation9 + $0x60] ss:$8 sps:$4 sm:$0xff]   ;;  %v3078_v35 = vld [vmem:[#allocation9 + $0x50] ss:$8 sps:$4 sm:$0xff]  }
  0x48   :  { %3002 = vmatprep.subr.bf16.mxu0 %v3605_v0  ;;  %333 = vmatpush1.bf16.msra.mxu1 %v3050_v12  ;;  %v3080_v34 = vld [vmem:[#allocation9 + $0x54] ss:$8 sps:$4 sm:$0xff]   ;;  %v3086_v36 = vld [vmem:[#allocation9 + $0x44] ss:$8 sps:$4 sm:$0xff]   ;;  %v3084_v37 = vld [vmem:[#allocation9 + $0x40] ss:$8 sps:$4 sm:$0xff]   ;;  %p3576_p1 = pnand %p3575_p0, %p3569_p11 }
  0x49   :  { %334 = vmatprep.subr.bf16.mxu1 %v3051_v13  ;;  %v3092_v38 = vld [vmem:[#allocation9 + $0x34] ss:$8 sps:$4 sm:$0xff]   ;;  %v3090_v39 = vld [vmem:[#allocation9 + $0x30] ss:$8 sps:$4 sm:$0xff]   ;;  %v3098_v40 = vld [vmem:[#allocation9 + $0x24] ss:$8 sps:$4 sm:$0xff]  }
  0x4a   :  { %v3096_v41 = vld [vmem:[#allocation9 + $0x20] ss:$8 sps:$4 sm:$0xff]   ;;  %v3104_v42 = vld [vmem:[#allocation9 + $0x14] ss:$8 sps:$4 sm:$0xff]   ;;  %v3102_v43 = vld [vmem:[#allocation9 + $0x10] ss:$8 sps:$4 sm:$0xff]  }
  0x4b   :  { %3003 = vmatpush3.bf16.msra.mxu0 %v3037_v4  ;;  %v3110_v44 = vld [vmem:[#allocation9 + $0x4] ss:$8 sps:$4 sm:$0xff]   ;;  %v3108_v45 = vld [vmem:[#allocation9] ss:$8 sps:$4 sm:$0xff]   ;;  %v3116_v46 = vld [vmem:[#allocation9 + $0xf4] ss:$8 sps:$4 sm:$0xff]  }
  0x4c   :  { %3004 = vmatprep.subr.bf16.mxu0 %v3605_v0  ;;  %335 = vmatpush1.bf16.msra.mxu1 %v3053_v14  ;;  %v3114_v47 = vld [vmem:[#allocation9 + $0xf0] ss:$8 sps:$4 sm:$0xff]   ;;  %v2661_v48 = vld [vmem:[%s3761_s2] ss:$0 sm:$0xff]  ;;  %v3077_v59 = vld [vmem:[#allocation9 + $0x164] ss:$8 sps:$4 sm:$0xff]  }
  0x4d   :  { %336 = vmatprep.subr.bf16.mxu1 %v3054_v15  ;;  %v3069_v57 = vld [vmem:[#allocation9 + $0x170] ss:$8 sps:$4 sm:$0xff]   ;;  %v3075_v60 = vld [vmem:[#allocation9 + $0x160] ss:$8 sps:$4 sm:$0xff]   ;;  %v3083_v61 = vld [vmem:[#allocation9 + $0x154] ss:$8 sps:$4 sm:$0xff]  }
  0x4e   :  { %v3081_v62 = vld [vmem:[#allocation9 + $0x150] ss:$8 sps:$4 sm:$0xff]   ;;  %v3089_v63 = vld [vmem:[#allocation9 + $0x144] ss:$8 sps:$4 sm:$0xff]   ;;  %v3095_v1 = vld [vmem:[#allocation9 + $0x134] ss:$8 sps:$4 sm:$0xff]  }
  0x4f   :  { %3005 = vmatpush3.bf16.msra.mxu0 %v3038_v10  ;;  %v3093_v2 = vld [vmem:[#allocation9 + $0x130] ss:$8 sps:$4 sm:$0xff]   ;;  %v3101_v3 = vld [vmem:[#allocation9 + $0x124] ss:$8 sps:$4 sm:$0xff]   ;;  %v3099_v4 = vld [vmem:[#allocation9 + $0x120] ss:$8 sps:$4 sm:$0xff]  }
  0x50   :  { %3006 = vmatprep.subr.bf16.mxu0 %v3605_v0  ;;  %337 = vmatpush1.bf16.msra.mxu1 %v3056_v17  ;;  %v3107_v5 = vld [vmem:[#allocation9 + $0x114] ss:$8 sps:$4 sm:$0xff]   ;;  %v3105_v6 = vld [vmem:[#allocation9 + $0x110] ss:$8 sps:$4 sm:$0xff]   ;;  %v3113_v7 = vld [vmem:[#allocation9 + $0x104] ss:$8 sps:$4 sm:$0xff]  }
  0x51   :  { %338 = vmatprep.subr.bf16.mxu1 %v3057_v18  ;;  %v3111_v8 = vld [vmem:[#allocation9 + $0x100] ss:$8 sps:$4 sm:$0xff]   ;;  %v3119_v9 = vld [vmem:[#allocation9 + $0x1f4] ss:$8 sps:$4 sm:$0xff]   ;;  %v3117_v10 = vld [vmem:[#allocation9 + $0x1f0] ss:$8 sps:$4 sm:$0xff]  }
  0x52   :  { %v3120_v12 = vld [vmem:[#allocation9 + $0xe0] ss:$8 sps:$4 sm:$0xff]   ;;  %v3125_v13 = vld [vmem:[#allocation9 + $0x1e4] ss:$8 sps:$4 sm:$0xff]   ;;  %v3128_v15 = vld [vmem:[#allocation9 + $0xd4] ss:$8 sps:$4 sm:$0xff]  }
  0x53   :  { %3007 = vmatpush3.bf16.msra.mxu0 %v3039_v11  ;;  %v3122_v11 = vld [vmem:[#allocation9 + $0xe4] ss:$8 sps:$4 sm:$0xff]   ;;  %v3123_v14 = vld [vmem:[#allocation9 + $0x1e0] ss:$8 sps:$4 sm:$0xff]   ;;  %v3131_v17 = vld [vmem:[#allocation9 + $0x1d4] ss:$8 sps:$4 sm:$0xff]  }
  0x54   :  { %3008 = vmatprep.subr.bf16.mxu0 %v3605_v0  ;;  %339 = vmatpush1.bf16.msra.mxu1 %v3059_v23  ;;  %v3129_v18 = vld [vmem:[#allocation9 + $0x1d0] ss:$8 sps:$4 sm:$0xff]   ;;  %v3132_v20 = vld [vmem:[#allocation9 + $0xc0] ss:$8 sps:$4 sm:$0xff]   ;;  %v3137_v21 = vld [vmem:[#allocation9 + $0x1c4] ss:$8 sps:$4 sm:$0xff]  }
  0x55   :  { %340 = vmatprep.subr.bf16.mxu1 %v3060_v24  ;;  %v3140_v23 = vld [vmem:[#allocation9 + $0xb4] ss:$8 sps:$4 sm:$0xff]   ;;  %v3138_v24 = vld [vmem:[#allocation9 + $0xb0] ss:$8 sps:$4 sm:$0xff]   ;;  %v3144_v28 = vld [vmem:[#allocation9 + $0xa0] ss:$8 sps:$4 sm:$0xff]  }
  0x57   :  { %3009 = vmatpush3.bf16.msra.mxu0 %v3040_v16  ;;  %v3126_v16 = vld [vmem:[#allocation9 + $0xd0] ss:$8 sps:$4 sm:$0xff]  }
  0x58   :  { %3010 = vmatprep.subr.bf16.mxu0 %v3605_v0  ;;  %341 = vmatpush1.bf16.msra.mxu1 %v3062_v25  ;;  %v3087_v0 = vld [vmem:[#allocation9 + $0x140] ss:$8 sps:$4 sm:$0xff]   ;;  %v3143_v25 = vld [vmem:[#allocation9 + $0x1b4] ss:$8 sps:$4 sm:$0xff]  }
  0x59   :  { %342 = vmatprep.subr.bf16.mxu1 %v3063_v26  ;;  %v3141_v26 = vld [vmem:[#allocation9 + $0x1b0] ss:$8 sps:$4 sm:$0xff]  }
  0x5b   :  { %3011 = vmatpush3.bf16.msra.mxu0 %v3041_v19  ;;  %v3134_v19 = vld [vmem:[#allocation9 + $0xc4] ss:$8 sps:$4 sm:$0xff]  }
  0x5c   :  { %343 = vmatpush1.bf16.msra.mxu1 %v3065_v27  ;;  %2111 = vmatprep.subr.bf16.mxu0 %v3068_v30  ;;  %v3146_v27 = vld [vmem:[#allocation9 + $0xa4] ss:$8 sps:$4 sm:$0xff]   ;;  %v3147_v30 = vld [vmem:[#allocation9 + $0x1a0] ss:$8 sps:$4 sm:$0xff]  }
  0x5d   :  { %2152 = vmatprep.subr.bf16.mxu1 %v3071_v31  ;;  %v3150_v31 = vld [vmem:[#allocation9 + $0x90] ss:$8 sps:$4 sm:$0xff]  }
  0x5e   :  { %3013 = vmatmul.mubr.bf16.vlgmr.msra.gmra.mxu0 %v104_v22  ;;  %v3135_v22 = vld [vmem:[#allocation9 + $0x1c0] ss:$8 sps:$4 sm:$0xff]  }
  0x5f   :  { %2112 = vmatpush1.bf16.msra.mxu0 %v3066_v29  ;;  %v3149_v29 = vld [vmem:[#allocation9 + $0x1a4] ss:$8 sps:$4 sm:$0xff]  }
  0x60   :  { %2113 = vmatprep.subr.bf16.mxu0 %v3074_v32  ;;  %v3152_v32 = vld [vmem:[#allocation9 + $0x94] ss:$8 sps:$4 sm:$0xff]  }
  0x63   :  { %2114 = vmatpush1.bf16.msra.mxu0 %v3072_v33  ;;  %v3153_v33 = vld [vmem:[#allocation9 + $0x190] ss:$8 sps:$4 sm:$0xff]  }
  0x64   :  { %2115 = vmatprep.subr.bf16.mxu0 %v3080_v34  ;;  %v3155_v34 = vld [vmem:[#allocation9 + $0x194] ss:$8 sps:$4 sm:$0xff]  }
  0x67   :  { %2116 = vmatpush1.bf16.msra.mxu0 %v3078_v35  ;;  %v3158_v35 = vld [vmem:[#allocation9 + $0x84] ss:$8 sps:$4 sm:$0xff]  }
  0x68   :  { %2117 = vmatprep.subr.bf16.mxu0 %v3086_v36  ;;  %v3161_v36 = vld [vmem:[#allocation9 + $0x184] ss:$8 sps:$4 sm:$0xff]  }
  0x6b   :  { %2118 = vmatpush1.bf16.msra.mxu0 %v3084_v37  ;;  %v3156_v37 = vld [vmem:[#allocation9 + $0x80] ss:$8 sps:$4 sm:$0xff]  }
  0x6c   :  { %2119 = vmatprep.subr.bf16.mxu0 %v3092_v38  ;;  %v3159_v38 = vld [vmem:[#allocation9 + $0x180] ss:$8 sps:$4 sm:$0xff]  }
  0x6f   :  { %2120 = vmatpush1.bf16.msra.mxu0 %v3090_v39  ;;  %v3164_v39 = vld [vmem:[#allocation9 + $0x274] ss:$8 sps:$4 sm:$0xff]  }
  0x70   :  { %2121 = vmatprep.subr.bf16.mxu0 %v3098_v40  ;;  %v3168_v40 = vld [vmem:[#allocation9 + $0x374] ss:$8 sps:$4 sm:$0xff]  }
  0x73   :  { %2122 = vmatpush1.bf16.msra.mxu0 %v3096_v41  ;;  %v238_v41 = vlaneseq }
  0x74   :  { %2123 = vmatprep.subr.bf16.mxu0 %v3104_v42 }
  0x75   :  { %v3686_v42 = vshrl.u32 %v238_v41, 7 }
  0x77   :  { %2124 = vmatpush1.bf16.msra.mxu0 %v3102_v43  ;;  %v240_v43 = vsub.s32 0, %v3686_v42 }
  0x78   :  { %2125 = vmatprep.subr.bf16.mxu0 %v3110_v44  ;;  %v236_v44 = vld [vmem:[%s3763_s4] sm:$0x3] }
  0x7b   :  { %2126 = vmatpush1.bf16.msra.mxu0 %v3108_v45  ;;  %v244_v45 = vsub.s32 1, %v3686_v42 }
  0x7c   :  { %2127 = vmatprep.subr.bf16.mxu0 %v3116_v46  ;;  %v241_v46 = vrot.slane %v236_v44, %v240_v43 }
  0x7f   :  { %2128 = vmatpush2.bf16.msra.mxu0 %v3114_v47  ;;  %v3608_v47 = vmov 1966171168  }
  0x80   :  { %2129 = vmatprep.subr.bf16.mxu0 %v3122_v11 }
  0x83   :  { %2130 = vmatpush2.bf16.msra.mxu0 %v3120_v12 }
  0x84   :  { %2131 = vmatprep.subr.bf16.mxu0 %v3128_v15 }
  0x87   :  { %2132 = vmatpush2.bf16.msra.mxu0 %v3126_v16 }
  0x88   :  { %2133 = vmatprep.subr.bf16.mxu0 %v3134_v19 }
  0x8b   :  { %2134 = vmatpush2.bf16.msra.mxu0 %v3132_v20 }
  0x8c   :  { %2135 = vmatprep.subr.bf16.mxu0 %v3140_v23 }
  0x8f   :  { %2136 = vmatpush2.bf16.msra.mxu0 %v3138_v24 }
  0x90   :  { %2137 = vmatprep.subr.bf16.mxu0 %v3146_v27 }
  0x93   :  { %2138 = vmatpush2.bf16.msra.mxu0 %v3144_v28 }
  0x94   :  { %2139 = vmatprep.subr.bf16.mxu0 %v3152_v32  ;;  %v3174_v32 = vld [vmem:[#allocation9 + $0x364] ss:$8 sps:$4 sm:$0xff]  }
  0x97   :  { %2140 = vmatpush2.bf16.msra.mxu0 %v3150_v31 }
  0x98   :  { %2141 = vmatprep.subr.bf16.mxu0 %v3158_v35  ;;  %v3169_v35 = vld [vmem:[#allocation9 + $0x260] ss:$8 sps:$4 sm:$0xff]  }
  0x9b   :  { %2142 = vmatpush2.bf16.msra.mxu0 %v3156_v37  ;;  %v3177_v37 = vld [vmem:[#allocation9 + $0x254] ss:$8 sps:$4 sm:$0xff]  }
  0x9c   :  { %2193 = vmatprep.subr.bf16.mxu0 %v3164_v39 }
 0x11e   :  { %v210_v49 = vpop.f32.mrf.mxu0 }
 0x11f   :  { %v211_v51 = vadd.f32 %v2661_v48, %v210_v49  ;;  %v245_v49 = vrot.slane %v236_v44, %v244_v45  ;;  %v3175_v44 = vld [vmem:[#allocation9 + $0x250] ss:$8 sps:$4 sm:$0xff]  }
 0x120   :  { %v3014_v50 = vpop.f32.mrf.mxu0 }
 0x121   :  { %v217_v55 = vmax.f32 %v211_v51, 0.0 }
 0x122   :  { %v213_v52 = vpop.f32.mrf.mxu0 }
 0x123   :  { %v214_v53 = vadd.f32 %v2661_v48, %v213_v52  ;;  %v381_v48 = vunpack.c.l.s4 %v3608_v47  ;;  %v3178_v47 = vld [vmem:[#allocation9 + $0x350] ss:$8 sps:$4 sm:$0xff]  }
 0x124   :  { %v3015_v54 = vpop.f32.mrf.mxu0 }
 0x125   :  { %v218_v56 = vmax.f32 %v214_v53, 0.0  ;;  %v382_v52 = vunpack.c.0.s8 %v381_v48  ;;  %v3186_v48 = vld [vmem:[#allocation9 + $0x344] ss:$8 sps:$4 sm:$0xff]  }
 0x127   :  { %v219_v58 = vpack.c.bf16 %v218_v56, %v217_v55 }
 0x129   :  { %361 = vmatmul.mubr.bf16.vlgmr.msra.gmra.mxu1 %v219_v58 }
 0x12a   :  { %2153 = vmatpush1.bf16.msra.mxu1 %v3069_v57  ;;  %v3698_v57 = vsub.s32 %v382_v52, %v3686_v42  ;;  %v3192_v52 = vld [vmem:[#allocation9 + $0x334] ss:$8 sps:$4 sm:$0xff]  }
 0x12b   :  { %2154 = vmatprep.subr.bf16.mxu1 %v3077_v59  ;;  %v3452_v42 = vld [vmem:[#allocation11 + $0x78] sm:$0xff]  }
 0x12e   :  { %2155 = vmatpush1.bf16.msra.mxu1 %v3075_v60 }
 0x12f   :  { %2156 = vmatprep.subr.bf16.mxu1 %v3083_v61 }
 0x132   :  { %2157 = vmatpush1.bf16.msra.mxu1 %v3081_v62 }
 0x133   :  { %2158 = vmatprep.subr.bf16.mxu1 %v3089_v63 }
 0x136   :  { %2159 = vmatpush1.bf16.msra.mxu1 %v3087_v0 }
 0x137   :  { %2160 = vmatprep.subr.bf16.mxu1 %v3095_v1 }
 0x13a   :  { %2161 = vmatpush1.bf16.msra.mxu1 %v3093_v2 }
 0x13b   :  { %2162 = vmatprep.subr.bf16.mxu1 %v3101_v3 }
 0x13e   :  { %2163 = vmatpush1.bf16.msra.mxu1 %v3099_v4 }
 0x13f   :  { %2164 = vmatprep.subr.bf16.mxu1 %v3107_v5 }
 0x142   :  { %2165 = vmatpush1.bf16.msra.mxu1 %v3105_v6 }
 0x143   :  { %2166 = vmatprep.subr.bf16.mxu1 %v3113_v7 }
 0x146   :  { %2167 = vmatpush1.bf16.msra.mxu1 %v3111_v8 }
 0x147   :  { %2168 = vmatprep.subr.bf16.mxu1 %v3119_v9 }
 0x14a   :  { %2169 = vmatpush2.bf16.msra.mxu1 %v3117_v10 }
 0x14b   :  { %2170 = vmatprep.subr.bf16.mxu1 %v3125_v13 }
 0x14e   :  { %2171 = vmatpush2.bf16.msra.mxu1 %v3123_v14 }
 0x14f   :  { %2172 = vmatprep.subr.bf16.mxu1 %v3131_v17 }
 0x152   :  { %2173 = vmatpush2.bf16.msra.mxu1 %v3129_v18 }
 0x153   :  { %2174 = vmatprep.subr.bf16.mxu1 %v3137_v21 }
 0x156   :  { %2175 = vmatpush2.bf16.msra.mxu1 %v3135_v22  ;;  %v3162_v22 = vld [vmem:[#allocation9 + $0x270] ss:$8 sps:$4 sm:$0xff]  }
 0x157   :  { %2176 = vmatprep.subr.bf16.mxu1 %v3143_v25 }
 0x15a   :  { %2177 = vmatpush2.bf16.msra.mxu1 %v3141_v26 }
 0x15b   :  { %2178 = vmatprep.subr.bf16.mxu1 %v3149_v29  ;;  %v3166_v29 = vld [vmem:[#allocation9 + $0x370] ss:$8 sps:$4 sm:$0xff]  }
 0x15e   :  { %2179 = vmatpush2.bf16.msra.mxu1 %v3147_v30  ;;  %v3171_v30 = vld [vmem:[#allocation9 + $0x264] ss:$8 sps:$4 sm:$0xff]  }
 0x15f   :  { %2180 = vmatprep.subr.bf16.mxu1 %v3155_v34 }
 0x162   :  { %2181 = vmatpush2.bf16.msra.mxu1 %v3153_v33 }
 0x163   :  { %2182 = vmatprep.subr.bf16.mxu1 %v3161_v36 }
 0x166   :  { %2183 = vmatpush2.bf16.msra.mxu1 %v3159_v38  ;;  %v3172_v38 = vld [vmem:[#allocation9 + $0x360] ss:$8 sps:$4 sm:$0xff]  }
 0x167   :  { %2234 = vmatprep.subr.bf16.mxu1 %v3168_v40  ;;  %v3180_v40 = vld [vmem:[#allocation9 + $0x354] ss:$8 sps:$4 sm:$0xff]  }
 0x1e9   :  { %v362_v50 = vpop.f32.mrf.mxu1 }
 0x1ea   :  { %v363_v51 = vadd.f32 %v362_v50, %v241_v46  ;;  %v3189_v50 = vld [vmem:[#allocation9 + $0x234] ss:$8 sps:$4 sm:$0xff]  }
 0x1eb   :  { %v364_v53 = vpop.f32.mrf.mxu1 }
 0x1ec   :  { %v365_v54 = vadd.f32 %v364_v53, %v245_v49  ;;  %v371_v56 = vmax.f32 %v363_v51, 0.0  ;;  %v3184_v51 = vld [vmem:[#allocation9 + $0x340] ss:$8 sps:$4 sm:$0xff]   ;;  %v3187_v53 = vld [vmem:[#allocation9 + $0x230] ss:$8 sps:$4 sm:$0xff]  }
 0x1ed   :  { %v366_v55 = vpop.f32.mrf.mxu1 }
 0x1ee   :  { %v372_v58 = vmax.f32 %v365_v54, 0.0  ;;  %v367_v59 = vadd.f32 %v366_v55, %v241_v46  ;;  %v3183_v46 = vld [vmem:[#allocation9 + $0x244] ss:$8 sps:$4 sm:$0xff]   ;;  %v3190_v55 = vld [vmem:[#allocation9 + $0x330] ss:$8 sps:$4 sm:$0xff]  }
 0x1ef   :  { %v368_v60 = vpop.f32.mrf.mxu1  ;;  %v3195_v54 = vld [vmem:[#allocation9 + $0x224] ss:$8 sps:$4 sm:$0xff]  }
 0x1f0   :  { %v2686_v61 = vpack.c.bf16 %v372_v58, %v371_v56  ;;  %v369_v62 = vadd.f32 %v368_v60, %v245_v49  ;;  %v373_v0 = vmax.f32 %v367_v59, 0.0  ;;  %v3181_v49 = vld [vmem:[#allocation9 + $0x240] ss:$8 sps:$4 sm:$0xff]   ;;  %v3198_v56 = vld [vmem:[#allocation9 + $0x324] ss:$8 sps:$4 sm:$0xff]  }
 0x1f1   :  { %v3193_v58 = vld [vmem:[#allocation9 + $0x220] ss:$8 sps:$4 sm:$0xff]   ;;  %v3201_v59 = vld [vmem:[#allocation9 + $0x214] ss:$8 sps:$4 sm:$0xff]  }
 0x1f2   :  { %v386_v63 = vrot.slane %v2686_v61, %v3698_v57  ;;  %v374_v1 = vmax.f32 %v369_v62, 0.0  ;;  %v3196_v60 = vld [vmem:[#allocation9 + $0x320] ss:$8 sps:$4 sm:$0xff]   ;;  %v3204_v61 = vld [vmem:[#allocation9 + $0x314] ss:$8 sps:$4 sm:$0xff]  }
 0x1f3   :  { %v3199_v62 = vld [vmem:[#allocation9 + $0x210] ss:$8 sps:$4 sm:$0xff]  }
 0x1f4   :  { %v393_v2 = vrot.slane %v386_v63, %v3698_v57  ;;  %2687 = vst.sshfl [vmem:[#allocation2] sm:$0x5 pattern:$0x73625140] %v386_v63  ;;  %v396_v3 = vcombine.high %v386_v63, %v386_v63  ;;  %v2689_v4 = vpack.c.bf16 %v374_v1, %v373_v0  ;;  %v3207_v63 = vld [vmem:[#allocation9 + $0x204] ss:$8 sps:$4 sm:$0xff]  }
 0x1f5   :  { %v3202_v0 = vld [vmem:[#allocation9 + $0x310] ss:$8 sps:$4 sm:$0xff]   ;;  %v3210_v1 = vld [vmem:[#allocation9 + $0x304] ss:$8 sps:$4 sm:$0xff]  }
 0x1f6   :  { %v403_v5 = vrot.slane %v396_v3, %v3698_v57  ;;  %2688 = vst.sshfl [vmem:[#allocation2 + $0x2] sm:$0x5 pattern:$0x73625140] %v396_v3  ;;  %v406_v6 = vcombine.high %v393_v2, %v393_v2  ;;  %v419_v7 = vrot.slane %v2689_v4, %v3698_v57  ;;  %v3205_v2 = vld [vmem:[#allocation9 + $0x200] ss:$8 sps:$4 sm:$0xff]  }
 0x1f7   :  { %v3213_v3 = vld [vmem:[#allocation9 + $0x2f4] ss:$8 sps:$4 sm:$0xff]   ;;  %v3208_v4 = vld [vmem:[#allocation9 + $0x300] ss:$8 sps:$4 sm:$0xff]  }
 0x1f8   :  { %408 = vst [vmem:[#allocation2 + $0x4] sm:$0x3] %v406_v6  ;;  %v409_v8 = vcombine.high %v403_v5, %v403_v5  ;;  %v426_v9 = vrot.slane %v419_v7, %v3698_v57  ;;  %2690 = vst.sshfl [vmem:[#allocation2 + $0x8] sm:$0x5 pattern:$0x73625140] %v419_v7  ;;  %v429_v10 = vcombine.high %v419_v7, %v419_v7 }
 0x1f9   :  { %v3216_v5 = vld [vmem:[#allocation9 + $0x3f4] ss:$8 sps:$4 sm:$0xff]   ;;  %v3211_v6 = vld [vmem:[#allocation9 + $0x2f0] ss:$8 sps:$4 sm:$0xff]   ;;  %v3219_v7 = vld [vmem:[#allocation9 + $0x2e4] ss:$8 sps:$4 sm:$0xff]  }
 0x1fa   :  { %411 = vst [vmem:[#allocation2 + $0x6] sm:$0x3] %v409_v8  ;;  %v436_v11 = vrot.slane %v429_v10, %v3698_v57  ;;  %2691 = vst.sshfl [vmem:[#allocation2 + $0xa] sm:$0x5 pattern:$0x73625140] %v429_v10  ;;  %v439_v12 = vcombine.high %v426_v9, %v426_v9 }
 0x1fb   :  { %v3214_v8 = vld [vmem:[#allocation9 + $0x3f0] ss:$8 sps:$4 sm:$0xff]   ;;  %v3222_v9 = vld [vmem:[#allocation9 + $0x3e4] ss:$8 sps:$4 sm:$0xff]   ;;  %v3217_v10 = vld [vmem:[#allocation9 + $0x2e0] ss:$8 sps:$4 sm:$0xff]  }
 0x1fc   :  { %441 = vst [vmem:[#allocation2 + $0xc] sm:$0x3] %v439_v12  ;;  %v442_v13 = vcombine.high %v436_v11, %v436_v11  ;;  %v3225_v11 = vld [vmem:[#allocation9 + $0x2d4] ss:$8 sps:$4 sm:$0xff]   ;;  %v3220_v12 = vld [vmem:[#allocation9 + $0x3e0] ss:$8 sps:$4 sm:$0xff]  }
 0x1fe   :  { %444 = vst [vmem:[#allocation2 + $0xe] sm:$0x3] %v442_v13  ;;  %v3228_v13 = vld [vmem:[#allocation9 + $0x3d4] ss:$8 sps:$4 sm:$0xff]  }
 0x201   :  { %v445_v14 = vld [vmem:[#allocation2] sm:$0xff] }
 0x202   :  { %v724_v15 = vrot.slane %v445_v14, %v3698_v57  ;;  %v717_v16 = vcombine.high %v445_v14, %v445_v14  ;;  %v3223_v14 = vld [vmem:[#allocation9 + $0x2d0] ss:$8 sps:$4 sm:$0xff]  }
 0x204   :  { %v732_v17 = vcombine.high %v724_v15, %v724_v15  ;;  %v731_v18 = vrot.slane %v717_v16, %v3698_v57  ;;  %v740_v19 = vrot.slane %v724_v15, %v3698_v57  ;;  %v3231_v15 = vld [vmem:[#allocation9 + $0x2c4] ss:$8 sps:$4 sm:$0xff]   ;;  %v3226_v16 = vld [vmem:[#allocation9 + $0x3d0] ss:$8 sps:$4 sm:$0xff]  }
 0x205   :  { %v446_v20 = vld [vmem:[#allocation2 + $0x8] sm:$0xff] }
 0x206   :  { %v754_v21 = vrot.slane %v732_v17, %v3698_v57  ;;  %v733_v23 = vcombine.high %v731_v18, %v731_v18  ;;  %v3711_v24 = vrot.slane %v731_v18, %v3698_v57  ;;  %v3714_v25 = vrot.slane %v446_v20, %v3698_v57  ;;  %v3234_v17 = vld [vmem:[#allocation9 + $0x3c4] ss:$8 sps:$4 sm:$0xff]   ;;  %v3229_v18 = vld [vmem:[#allocation9 + $0x2c0] ss:$8 sps:$4 sm:$0xff]  }
 0x207   :  { %v766_v26 = vcombine.high %v446_v20, %v446_v20  ;;  %v762_v31 = vcombine.high %v740_v19, %v740_v19  ;;  %v3232_v20 = vld [vmem:[#allocation9 + $0x3c0] ss:$8 sps:$4 sm:$0xff]  }
 0x208   :  { %2143 = vmatprep.mubr.bf16.mxu0 %v754_v21  ;;  %v764_v27 = vcombine.high %v754_v21, %v754_v21  ;;  %v761_v28 = vrot.slane %v733_v23, %v3698_v57  ;;  %v3719_v33 = vrot.slane %v3714_v25, %v3698_v57  ;;  %v3240_v21 = vld [vmem:[#allocation9 + $0x3b4] ss:$8 sps:$4 sm:$0xff]   ;;  %v3243_v23 = vld [vmem:[#allocation9 + $0x2a4] ss:$8 sps:$4 sm:$0xff]  }
 0x209   :  { %2144 = vmatmul.mubr.bf16.vlgmr.msra.gmra.mxu0 %v740_v19  ;;  %v3722_v34 = vrot.slane %v766_v26, %v3698_v57  ;;  %v3237_v19 = vld [vmem:[#allocation9 + $0x2b4] ss:$8 sps:$4 sm:$0xff]   ;;  %v3238_v26 = vld [vmem:[#allocation9 + $0x3b0] ss:$8 sps:$4 sm:$0xff]  }
 0x20a   :  { %2194 = vmatpush1.bf16.msra.mxu0 %v3162_v22  ;;  %2184 = vmatprep.mubr.bf16.mxu1 %v764_v27  ;;  %v765_v36 = vcombine.high %v761_v28, %v761_v28  ;;  %v3235_v22 = vld [vmem:[#allocation9 + $0x2b0] ss:$8 sps:$4 sm:$0xff]   ;;  %v3246_v27 = vld [vmem:[#allocation9 + $0x3a4] ss:$8 sps:$4 sm:$0xff]  }
 0x20b   :  { %2225 = vmatprep.mubr.bf16.mxu0 %v761_v28  ;;  %2185 = vmatmul.mubr.bf16.vlgmr.msra.gmra.mxu1 %v762_v31  ;;  %v3726_v39 = vrot.slane %v3722_v34, %v3698_v57  ;;  %v3241_v28 = vld [vmem:[#allocation9 + $0x2a0] ss:$8 sps:$4 sm:$0xff]   ;;  %v3252_v31 = vld [vmem:[#allocation9 + $0x394] ss:$8 sps:$4 sm:$0xff]  }
 0x20c   :  { %2235 = vmatpush1.bf16.msra.mxu1 %v3166_v29  ;;  %2195 = vmatprep.subr.bf16.mxu0 %v3171_v30  ;;  %v3249_v29 = vld [vmem:[#allocation9 + $0x294] ss:$8 sps:$4 sm:$0xff]   ;;  %v3244_v30 = vld [vmem:[#allocation9 + $0x3a0] ss:$8 sps:$4 sm:$0xff]  }
 0x20d   :  { %2266 = vmatprep.mubr.bf16.mxu1 %v765_v36  ;;  %2236 = vmatprep.subr.bf16.mxu1 %v3174_v32  ;;  %v3247_v32 = vld [vmem:[#allocation9 + $0x290] ss:$8 sps:$4 sm:$0xff]  }
 0x20e   :  { %2196 = vmatpush1.bf16.msra.mxu0 %v3169_v35  ;;  %v3255_v35 = vld [vmem:[#allocation9 + $0x284] ss:$8 sps:$4 sm:$0xff]   ;;  %v3250_v36 = vld [vmem:[#allocation9 + $0x390] ss:$8 sps:$4 sm:$0xff]  }
 0x20f   :  { %2197 = vmatprep.subr.bf16.mxu0 %v3177_v37  ;;  %v3258_v37 = vld [vmem:[#allocation9 + $0x384] ss:$8 sps:$4 sm:$0xff]  }
 0x210   :  { %2237 = vmatpush1.bf16.msra.mxu1 %v3172_v38  ;;  %v3253_v38 = vld [vmem:[#allocation9 + $0x280] ss:$8 sps:$4 sm:$0xff]  }
 0x211   :  { %2238 = vmatprep.subr.bf16.mxu1 %v3180_v40  ;;  %v781_v40 = vcombine.high %v3714_v25, %v3714_v25  ;;  %v3270_v25 = vld [vmem:[#allocation9 + $0x564] ss:$8 sps:$4 sm:$0xff]  }
 0x212   :  { %2198 = vmatpush1.bf16.msra.mxu0 %v3175_v44  ;;  %v3261_v44 = vld [vmem:[#allocation9 + $0x474] ss:$8 sps:$4 sm:$0xff]  }
 0x213   :  { %2199 = vmatprep.subr.bf16.mxu0 %v3183_v46  ;;  %v3256_v46 = vld [vmem:[#allocation9 + $0x380] ss:$8 sps:$4 sm:$0xff]  }
 0x214   :  { %2239 = vmatpush1.bf16.msra.mxu1 %v3178_v47  ;;  %v3264_v47 = vld [vmem:[#allocation9 + $0x574] ss:$8 sps:$4 sm:$0xff]  }
 0x215   :  { %2240 = vmatprep.subr.bf16.mxu1 %v3186_v48  ;;  %v3259_v48 = vld [vmem:[#allocation9 + $0x470] ss:$8 sps:$4 sm:$0xff]  }
 0x216   :  { %2200 = vmatpush1.bf16.msra.mxu0 %v3181_v49  ;;  %v803_v49 = vrot.slane %v781_v40, %v3698_v57  ;;  %v3339_v40 = vld [vmem:[#allocation9 + $0x4a4] ss:$8 sps:$4 sm:$0xff]  }
 0x217   :  { %2201 = vmatprep.subr.bf16.mxu0 %v3189_v50  ;;  %v3267_v50 = vld [vmem:[#allocation9 + $0x464] ss:$8 sps:$4 sm:$0xff]  }
 0x218   :  { %2241 = vmatpush1.bf16.msra.mxu1 %v3184_v51  ;;  %v3262_v51 = vld [vmem:[#allocation9 + $0x570] ss:$8 sps:$4 sm:$0xff]  }
 0x219   :  { %2242 = vmatprep.subr.bf16.mxu1 %v3192_v52  ;;  %v763_v52 = vcombine.high %v3711_v24, %v3711_v24 }
 0x21a   :  { %2202 = vmatpush1.bf16.msra.mxu0 %v3187_v53  ;;  %v813_v53 = vcombine.high %v803_v49, %v803_v49 }
 0x21b   :  { %2203 = vmatprep.subr.bf16.mxu0 %v3195_v54  ;;  %v3265_v54 = vld [vmem:[#allocation9 + $0x460] ss:$8 sps:$4 sm:$0xff]  }
 0x21c   :  { %2243 = vmatpush1.bf16.msra.mxu1 %v3190_v55  ;;  %v3273_v55 = vld [vmem:[#allocation9 + $0x454] ss:$8 sps:$4 sm:$0xff]  }
 0x21d   :  { %2244 = vmatprep.subr.bf16.mxu1 %v3198_v56  ;;  %v3268_v56 = vld [vmem:[#allocation9 + $0x560] ss:$8 sps:$4 sm:$0xff]  }
 0x21e   :  { %2204 = vmatpush1.bf16.msra.mxu0 %v3193_v58  ;;  %v3276_v58 = vld [vmem:[#allocation9 + $0x554] ss:$8 sps:$4 sm:$0xff]  }
 0x21f   :  { %2205 = vmatprep.subr.bf16.mxu0 %v3201_v59  ;;  %v3271_v59 = vld [vmem:[#allocation9 + $0x450] ss:$8 sps:$4 sm:$0xff]  }
 0x220   :  { %2245 = vmatpush1.bf16.msra.mxu1 %v3196_v60  ;;  %v3279_v60 = vld [vmem:[#allocation9 + $0x444] ss:$8 sps:$4 sm:$0xff]  }
 0x221   :  { %2246 = vmatprep.subr.bf16.mxu1 %v3204_v61  ;;  %v3282_v61 = vld [vmem:[#allocation9 + $0x544] ss:$8 sps:$4 sm:$0xff]  }
 0x222   :  { %2206 = vmatpush1.bf16.msra.mxu0 %v3199_v62  ;;  %v3277_v62 = vld [vmem:[#allocation9 + $0x440] ss:$8 sps:$4 sm:$0xff]  }
 0x223   :  { %2207 = vmatprep.subr.bf16.mxu0 %v3207_v63  ;;  %v3285_v63 = vld [vmem:[#allocation9 + $0x434] ss:$8 sps:$4 sm:$0xff]  }
 0x224   :  { %2247 = vmatpush1.bf16.msra.mxu1 %v3202_v0  ;;  %v3280_v0 = vld [vmem:[#allocation9 + $0x540] ss:$8 sps:$4 sm:$0xff]  }
 0x225   :  { %2248 = vmatprep.subr.bf16.mxu1 %v3210_v1  ;;  %v3288_v1 = vld [vmem:[#allocation9 + $0x534] ss:$8 sps:$4 sm:$0xff]  }
 0x226   :  { %2208 = vmatpush1.bf16.msra.mxu0 %v3205_v2  ;;  %v3283_v2 = vld [vmem:[#allocation9 + $0x430] ss:$8 sps:$4 sm:$0xff]  }
 0x227   :  { %2209 = vmatprep.subr.bf16.mxu0 %v3213_v3  ;;  %v3291_v3 = vld [vmem:[#allocation9 + $0x424] ss:$8 sps:$4 sm:$0xff]  }
 0x228   :  { %2249 = vmatpush1.bf16.msra.mxu1 %v3208_v4  ;;  %v3286_v4 = vld [vmem:[#allocation9 + $0x530] ss:$8 sps:$4 sm:$0xff]  }
 0x229   :  { %2250 = vmatprep.subr.bf16.mxu1 %v3216_v5  ;;  %v3294_v5 = vld [vmem:[#allocation9 + $0x524] ss:$8 sps:$4 sm:$0xff]  }
 0x22a   :  { %2210 = vmatpush2.bf16.msra.mxu0 %v3211_v6  ;;  %v3289_v6 = vld [vmem:[#allocation9 + $0x420] ss:$8 sps:$4 sm:$0xff]  }
 0x22b   :  { %2211 = vmatprep.subr.bf16.mxu0 %v3219_v7  ;;  %v3297_v7 = vld [vmem:[#allocation9 + $0x414] ss:$8 sps:$4 sm:$0xff]  }
 0x22c   :  { %2251 = vmatpush2.bf16.msra.mxu1 %v3214_v8  ;;  %v3292_v8 = vld [vmem:[#allocation9 + $0x520] ss:$8 sps:$4 sm:$0xff]  }
 0x22d   :  { %2252 = vmatprep.subr.bf16.mxu1 %v3222_v9  ;;  %v3300_v9 = vld [vmem:[#allocation9 + $0x514] ss:$8 sps:$4 sm:$0xff]  }
 0x22e   :  { %2212 = vmatpush2.bf16.msra.mxu0 %v3217_v10  ;;  %v3295_v10 = vld [vmem:[#allocation9 + $0x410] ss:$8 sps:$4 sm:$0xff]  }
 0x22f   :  { %2213 = vmatprep.subr.bf16.mxu0 %v3225_v11  ;;  %v3303_v11 = vld [vmem:[#allocation9 + $0x404] ss:$8 sps:$4 sm:$0xff]  }
 0x230   :  { %2253 = vmatpush2.bf16.msra.mxu1 %v3220_v12  ;;  %v3298_v12 = vld [vmem:[#allocation9 + $0x510] ss:$8 sps:$4 sm:$0xff]  }
 0x231   :  { %2254 = vmatprep.subr.bf16.mxu1 %v3228_v13  ;;  %v3306_v13 = vld [vmem:[#allocation9 + $0x504] ss:$8 sps:$4 sm:$0xff]  }
 0x232   :  { %2214 = vmatpush2.bf16.msra.mxu0 %v3223_v14  ;;  %v3301_v14 = vld [vmem:[#allocation9 + $0x400] ss:$8 sps:$4 sm:$0xff]  }
 0x233   :  { %2215 = vmatprep.subr.bf16.mxu0 %v3231_v15  ;;  %v3309_v15 = vld [vmem:[#allocation9 + $0x4f4] ss:$8 sps:$4 sm:$0xff]  }
 0x234   :  { %2255 = vmatpush2.bf16.msra.mxu1 %v3226_v16  ;;  %v3304_v16 = vld [vmem:[#allocation9 + $0x500] ss:$8 sps:$4 sm:$0xff]  }
 0x235   :  { %2256 = vmatprep.subr.bf16.mxu1 %v3234_v17  ;;  %v3312_v17 = vld [vmem:[#allocation9 + $0x5f4] ss:$8 sps:$4 sm:$0xff]  }
 0x236   :  { %2216 = vmatpush2.bf16.msra.mxu0 %v3229_v18  ;;  %v3307_v18 = vld [vmem:[#allocation9 + $0x4f0] ss:$8 sps:$4 sm:$0xff]  }
 0x237   :  { %2217 = vmatprep.subr.bf16.mxu0 %v3237_v19  ;;  %v3315_v19 = vld [vmem:[#allocation9 + $0x4e4] ss:$8 sps:$4 sm:$0xff]  }
 0x238   :  { %2257 = vmatpush2.bf16.msra.mxu1 %v3232_v20  ;;  %v3310_v20 = vld [vmem:[#allocation9 + $0x5f0] ss:$8 sps:$4 sm:$0xff]  }
 0x239   :  { %2258 = vmatprep.subr.bf16.mxu1 %v3240_v21  ;;  %v3318_v21 = vld [vmem:[#allocation9 + $0x5e4] ss:$8 sps:$4 sm:$0xff]  }
 0x23a   :  { %2218 = vmatpush2.bf16.msra.mxu0 %v3235_v22  ;;  %v3313_v22 = vld [vmem:[#allocation9 + $0x4e0] ss:$8 sps:$4 sm:$0xff]  }
 0x23b   :  { %2219 = vmatprep.subr.bf16.mxu0 %v3243_v23  ;;  %v3321_v23 = vld [vmem:[#allocation9 + $0x4d4] ss:$8 sps:$4 sm:$0xff]  }
 0x23c   :  { %2259 = vmatpush2.bf16.msra.mxu1 %v3238_v26  ;;  %v3316_v26 = vld [vmem:[#allocation9 + $0x5e0] ss:$8 sps:$4 sm:$0xff]  }
 0x23d   :  { %2260 = vmatprep.subr.bf16.mxu1 %v3246_v27  ;;  %v3324_v27 = vld [vmem:[#allocation9 + $0x5d4] ss:$8 sps:$4 sm:$0xff]  }
 0x23e   :  { %2220 = vmatpush2.bf16.msra.mxu0 %v3241_v28  ;;  %v3319_v28 = vld [vmem:[#allocation9 + $0x4d0] ss:$8 sps:$4 sm:$0xff]  }
 0x23f   :  { %2221 = vmatprep.subr.bf16.mxu0 %v3249_v29  ;;  %v3327_v29 = vld [vmem:[#allocation9 + $0x4c4] ss:$8 sps:$4 sm:$0xff]  }
 0x240   :  { %2261 = vmatpush2.bf16.msra.mxu1 %v3244_v30  ;;  %v3322_v30 = vld [vmem:[#allocation9 + $0x5d0] ss:$8 sps:$4 sm:$0xff]  }
 0x241   :  { %2262 = vmatprep.subr.bf16.mxu1 %v3252_v31  ;;  %v3330_v31 = vld [vmem:[#allocation9 + $0x5c4] ss:$8 sps:$4 sm:$0xff]  }
 0x242   :  { %2222 = vmatpush2.bf16.msra.mxu0 %v3247_v32  ;;  %v3325_v32 = vld [vmem:[#allocation9 + $0x4c0] ss:$8 sps:$4 sm:$0xff]  }
 0x243   :  { %2223 = vmatprep.subr.bf16.mxu0 %v3255_v35  ;;  %v3333_v35 = vld [vmem:[#allocation9 + $0x4b4] ss:$8 sps:$4 sm:$0xff]  }
 0x244   :  { %2263 = vmatpush2.bf16.msra.mxu1 %v3250_v36  ;;  %v3328_v36 = vld [vmem:[#allocation9 + $0x5c0] ss:$8 sps:$4 sm:$0xff]  }
 0x245   :  { %2264 = vmatprep.subr.bf16.mxu1 %v3258_v37  ;;  %v3336_v37 = vld [vmem:[#allocation9 + $0x5b4] ss:$8 sps:$4 sm:$0xff]  }
 0x246   :  { %2224 = vmatpush2.bf16.msra.mxu0 %v3253_v38  ;;  %v3331_v38 = vld [vmem:[#allocation9 + $0x4b0] ss:$8 sps:$4 sm:$0xff]  }
 0x247   :  { %2275 = vmatprep.subr.bf16.mxu0 %v3261_v44  ;;  %v3334_v44 = vld [vmem:[#allocation9 + $0x5b0] ss:$8 sps:$4 sm:$0xff]  }
 0x248   :  { %2265 = vmatpush2.bf16.msra.mxu1 %v3256_v46  ;;  %v3342_v46 = vld [vmem:[#allocation9 + $0x5a4] ss:$8 sps:$4 sm:$0xff]  }
 0x249   :  { %2226 = vmatmul.mubr.bf16.vlgmr.msra.gmra.mxu0 %v3711_v24  ;;  %2316 = vmatprep.subr.bf16.mxu1 %v3264_v47  ;;  %v3274_v24 = vld [vmem:[#allocation9 + $0x550] ss:$8 sps:$4 sm:$0xff]   ;;  %v3337_v47 = vld [vmem:[#allocation9 + $0x4a0] ss:$8 sps:$4 sm:$0xff]  }
 0x24a   :  { %2276 = vmatpush1.bf16.msra.mxu0 %v3259_v48  ;;  %2307 = vmatprep.mubr.bf16.mxu0 %v803_v49  ;;  %v3345_v48 = vld [vmem:[#allocation9 + $0x494] ss:$8 sps:$4 sm:$0xff]   ;;  %v3340_v49 = vld [vmem:[#allocation9 + $0x5a0] ss:$8 sps:$4 sm:$0xff]  }
 0x24b   :  { %2267 = vmatmul.mubr.bf16.vlgmr.msra.gmra.mxu1 %v763_v52  ;;  %2277 = vmatprep.subr.bf16.mxu0 %v3267_v50  ;;  %v3348_v50 = vld [vmem:[#allocation9 + $0x594] ss:$8 sps:$4 sm:$0xff]   ;;  %v3351_v52 = vld [vmem:[#allocation9 + $0x484] ss:$8 sps:$4 sm:$0xff]  }
 0x24c   :  { %2317 = vmatpush1.bf16.msra.mxu1 %v3262_v51  ;;  %2348 = vmatprep.mubr.bf16.mxu1 %v813_v53  ;;  %v3343_v51 = vld [vmem:[#allocation9 + $0x490] ss:$8 sps:$4 sm:$0xff]   ;;  %v3354_v53 = vld [vmem:[#allocation9 + $0x584] ss:$8 sps:$4 sm:$0xff]  }
 0x24d   :  { %2318 = vmatprep.subr.bf16.mxu1 %v3270_v25  ;;  %v3346_v25 = vld [vmem:[#allocation9 + $0x590] ss:$8 sps:$4 sm:$0xff]  }
 0x24e   :  { %2278 = vmatpush1.bf16.msra.mxu0 %v3265_v54  ;;  %v3349_v54 = vld [vmem:[#allocation9 + $0x480] ss:$8 sps:$4 sm:$0xff]  }
 0x24f   :  { %2279 = vmatprep.subr.bf16.mxu0 %v3273_v55  ;;  %v782_v55 = vcombine.high %v3722_v34, %v3722_v34  ;;  %v3367_v34 = vld [vmem:[#allocation9 + $0x764] ss:$8 sps:$4 sm:$0xff]  }
 0x250   :  { %2319 = vmatpush1.bf16.msra.mxu1 %v3268_v56  ;;  %v3357_v56 = vld [vmem:[#allocation9 + $0x674] ss:$8 sps:$4 sm:$0xff]  }
 0x251   :  { %2320 = vmatprep.subr.bf16.mxu1 %v3276_v58  ;;  %v3352_v58 = vld [vmem:[#allocation9 + $0x580] ss:$8 sps:$4 sm:$0xff]  }
 0x252   :  { %2280 = vmatpush1.bf16.msra.mxu0 %v3271_v59  ;;  %v3361_v59 = vld [vmem:[#allocation9 + $0x774] ss:$8 sps:$4 sm:$0xff]  }
 0x253   :  { %2281 = vmatprep.subr.bf16.mxu0 %v3279_v60  ;;  %v3355_v60 = vld [vmem:[#allocation9 + $0x670] ss:$8 sps:$4 sm:$0xff]  }
 0x254   :  { %2321 = vmatpush1.bf16.msra.mxu1 %v3274_v24  ;;  %v810_v24 = vrot.slane %v782_v55, %v3698_v57  ;;  %v3365_v57 = vld [vmem:[#allocation9 + $0x760] ss:$8 sps:$4 sm:$0xff]  }
 0x255   :  { %2322 = vmatprep.subr.bf16.mxu1 %v3282_v61  ;;  %v3364_v61 = vld [vmem:[#allocation9 + $0x664] ss:$8 sps:$4 sm:$0xff]   ;;  %v3434_v55 = vld [vmem:[#allocation9 + $0x6a0] ss:$8 sps:$4 sm:$0xff]  }
 0x256   :  { %2282 = vmatpush1.bf16.msra.mxu0 %v3277_v62  ;;  %v3359_v62 = vld [vmem:[#allocation9 + $0x770] ss:$8 sps:$4 sm:$0xff]  }
 0x257   :  { %2283 = vmatprep.subr.bf16.mxu0 %v3285_v63  ;;  %v811_v63 = vcombine.high %v3719_v33, %v3719_v33 }
 0x258   :  { %2323 = vmatpush1.bf16.msra.mxu1 %v3280_v0  ;;  %v814_v0 = vcombine.high %v810_v24, %v810_v24 }
 0x259   :  { %2324 = vmatprep.subr.bf16.mxu1 %v3288_v1  ;;  %v3362_v1 = vld [vmem:[#allocation9 + $0x660] ss:$8 sps:$4 sm:$0xff]  }
 0x25a   :  { %2284 = vmatpush1.bf16.msra.mxu0 %v3283_v2  ;;  %v3370_v2 = vld [vmem:[#allocation9 + $0x654] ss:$8 sps:$4 sm:$0xff]  }
 0x25b   :  { %2285 = vmatprep.subr.bf16.mxu0 %v3291_v3  ;;  %v3373_v3 = vld [vmem:[#allocation9 + $0x754] ss:$8 sps:$4 sm:$0xff]  }
 0x25c   :  { %2325 = vmatpush1.bf16.msra.mxu1 %v3286_v4  ;;  %v3368_v4 = vld [vmem:[#allocation9 + $0x650] ss:$8 sps:$4 sm:$0xff]  }
 0x25d   :  { %2326 = vmatprep.subr.bf16.mxu1 %v3294_v5  ;;  %v3376_v5 = vld [vmem:[#allocation9 + $0x644] ss:$8 sps:$4 sm:$0xff]  }
 0x25e   :  { %2286 = vmatpush1.bf16.msra.mxu0 %v3289_v6  ;;  %v3379_v6 = vld [vmem:[#allocation9 + $0x744] ss:$8 sps:$4 sm:$0xff]  }
 0x25f   :  { %2287 = vmatprep.subr.bf16.mxu0 %v3297_v7  ;;  %v3374_v7 = vld [vmem:[#allocation9 + $0x640] ss:$8 sps:$4 sm:$0xff]  }
 0x260   :  { %2327 = vmatpush1.bf16.msra.mxu1 %v3292_v8  ;;  %v3382_v8 = vld [vmem:[#allocation9 + $0x634] ss:$8 sps:$4 sm:$0xff]  }
 0x261   :  { %2328 = vmatprep.subr.bf16.mxu1 %v3300_v9  ;;  %v3377_v9 = vld [vmem:[#allocation9 + $0x740] ss:$8 sps:$4 sm:$0xff]  }
 0x262   :  { %2288 = vmatpush1.bf16.msra.mxu0 %v3295_v10  ;;  %v3385_v10 = vld [vmem:[#allocation9 + $0x734] ss:$8 sps:$4 sm:$0xff]  }
 0x263   :  { %2289 = vmatprep.subr.bf16.mxu0 %v3303_v11  ;;  %v3380_v11 = vld [vmem:[#allocation9 + $0x630] ss:$8 sps:$4 sm:$0xff]  }
 0x264   :  { %2329 = vmatpush1.bf16.msra.mxu1 %v3298_v12  ;;  %v3388_v12 = vld [vmem:[#allocation9 + $0x624] ss:$8 sps:$4 sm:$0xff]  }
 0x265   :  { %2330 = vmatprep.subr.bf16.mxu1 %v3306_v13  ;;  %v3383_v13 = vld [vmem:[#allocation9 + $0x730] ss:$8 sps:$4 sm:$0xff]  }
 0x266   :  { %2290 = vmatpush1.bf16.msra.mxu0 %v3301_v14  ;;  %v3391_v14 = vld [vmem:[#allocation9 + $0x724] ss:$8 sps:$4 sm:$0xff]  }
 0x267   :  { %2291 = vmatprep.subr.bf16.mxu0 %v3309_v15  ;;  %v3386_v15 = vld [vmem:[#allocation9 + $0x620] ss:$8 sps:$4 sm:$0xff]  }
 0x268   :  { %2331 = vmatpush1.bf16.msra.mxu1 %v3304_v16  ;;  %v3394_v16 = vld [vmem:[#allocation9 + $0x614] ss:$8 sps:$4 sm:$0xff]  }
 0x269   :  { %2332 = vmatprep.subr.bf16.mxu1 %v3312_v17  ;;  %v3389_v17 = vld [vmem:[#allocation9 + $0x720] ss:$8 sps:$4 sm:$0xff]  }
 0x26a   :  { %2292 = vmatpush2.bf16.msra.mxu0 %v3307_v18  ;;  %v3397_v18 = vld [vmem:[#allocation9 + $0x714] ss:$8 sps:$4 sm:$0xff]  }
 0x26b   :  { %2293 = vmatprep.subr.bf16.mxu0 %v3315_v19  ;;  %v3392_v19 = vld [vmem:[#allocation9 + $0x610] ss:$8 sps:$4 sm:$0xff]  }
 0x26c   :  { %2333 = vmatpush2.bf16.msra.mxu1 %v3310_v20  ;;  %v3400_v20 = vld [vmem:[#allocation9 + $0x604] ss:$8 sps:$4 sm:$0xff]  }
 0x26d   :  { %2334 = vmatprep.subr.bf16.mxu1 %v3318_v21  ;;  %v3395_v21 = vld [vmem:[#allocation9 + $0x710] ss:$8 sps:$4 sm:$0xff]  }
 0x26e   :  { %2294 = vmatpush2.bf16.msra.mxu0 %v3313_v22  ;;  %v3403_v22 = vld [vmem:[#allocation9 + $0x704] ss:$8 sps:$4 sm:$0xff]  }
 0x26f   :  { %2295 = vmatprep.subr.bf16.mxu0 %v3321_v23  ;;  %v3398_v23 = vld [vmem:[#allocation9 + $0x600] ss:$8 sps:$4 sm:$0xff]  }
 0x270   :  { %2335 = vmatpush2.bf16.msra.mxu1 %v3316_v26  ;;  %v3406_v26 = vld [vmem:[#allocation9 + $0x6f4] ss:$8 sps:$4 sm:$0xff]  }
 0x271   :  { %2336 = vmatprep.subr.bf16.mxu1 %v3324_v27  ;;  %v3401_v27 = vld [vmem:[#allocation9 + $0x700] ss:$8 sps:$4 sm:$0xff]  }
 0x272   :  { %2296 = vmatpush2.bf16.msra.mxu0 %v3319_v28  ;;  %v3409_v28 = vld [vmem:[#allocation9 + $0x7f4] ss:$8 sps:$4 sm:$0xff]  }
 0x273   :  { %2297 = vmatprep.subr.bf16.mxu0 %v3327_v29  ;;  %v3404_v29 = vld [vmem:[#allocation9 + $0x6f0] ss:$8 sps:$4 sm:$0xff]  }
 0x274   :  { %2337 = vmatpush2.bf16.msra.mxu1 %v3322_v30  ;;  %v3412_v30 = vld [vmem:[#allocation9 + $0x6e4] ss:$8 sps:$4 sm:$0xff]  }
 0x275   :  { %2338 = vmatprep.subr.bf16.mxu1 %v3330_v31  ;;  %v3407_v31 = vld [vmem:[#allocation9 + $0x7f0] ss:$8 sps:$4 sm:$0xff]  }
 0x276   :  { %2298 = vmatpush2.bf16.msra.mxu0 %v3325_v32  ;;  %v3415_v32 = vld [vmem:[#allocation9 + $0x7e4] ss:$8 sps:$4 sm:$0xff]  }
 0x277   :  { %2299 = vmatprep.subr.bf16.mxu0 %v3333_v35  ;;  %v3410_v35 = vld [vmem:[#allocation9 + $0x6e0] ss:$8 sps:$4 sm:$0xff]  }
 0x278   :  { %2339 = vmatpush2.bf16.msra.mxu1 %v3328_v36  ;;  %v3418_v36 = vld [vmem:[#allocation9 + $0x6d4] ss:$8 sps:$4 sm:$0xff]  }
 0x279   :  { %2340 = vmatprep.subr.bf16.mxu1 %v3336_v37  ;;  %v3413_v37 = vld [vmem:[#allocation9 + $0x7e0] ss:$8 sps:$4 sm:$0xff]  }
 0x27a   :  { %2300 = vmatpush2.bf16.msra.mxu0 %v3331_v38  ;;  %v3421_v38 = vld [vmem:[#allocation9 + $0x7d4] ss:$8 sps:$4 sm:$0xff]  }
 0x27b   :  { %2301 = vmatprep.subr.bf16.mxu0 %v3339_v40  ;;  %v3416_v40 = vld [vmem:[#allocation9 + $0x6d0] ss:$8 sps:$4 sm:$0xff]  }
 0x27c   :  { %2341 = vmatpush2.bf16.msra.mxu1 %v3334_v44  ;;  %v3424_v44 = vld [vmem:[#allocation9 + $0x6c4] ss:$8 sps:$4 sm:$0xff]  }
 0x27d   :  { %2342 = vmatprep.subr.bf16.mxu1 %v3342_v46  ;;  %v3419_v46 = vld [vmem:[#allocation9 + $0x7d0] ss:$8 sps:$4 sm:$0xff]  }
 0x27e   :  { %2302 = vmatpush2.bf16.msra.mxu0 %v3337_v47  ;;  %v3427_v47 = vld [vmem:[#allocation9 + $0x7c4] ss:$8 sps:$4 sm:$0xff]  }
 0x27f   :  { %2303 = vmatprep.subr.bf16.mxu0 %v3345_v48  ;;  %v3422_v48 = vld [vmem:[#allocation9 + $0x6c0] ss:$8 sps:$4 sm:$0xff]  }
 0x280   :  { %2343 = vmatpush2.bf16.msra.mxu1 %v3340_v49  ;;  %v3430_v49 = vld [vmem:[#allocation9 + $0x6b4] ss:$8 sps:$4 sm:$0xff]  }
 0x281   :  { %2344 = vmatprep.subr.bf16.mxu1 %v3348_v50  ;;  %v3425_v50 = vld [vmem:[#allocation9 + $0x7c0] ss:$8 sps:$4 sm:$0xff]  }
 0x282   :  { %2304 = vmatpush2.bf16.msra.mxu0 %v3343_v51  ;;  %v3433_v51 = vld [vmem:[#allocation9 + $0x7b4] ss:$8 sps:$4 sm:$0xff]  }
 0x283   :  { %2305 = vmatprep.subr.bf16.mxu0 %v3351_v52  ;;  %v3428_v52 = vld [vmem:[#allocation9 + $0x6b0] ss:$8 sps:$4 sm:$0xff]  }
 0x284   :  { %2345 = vmatpush2.bf16.msra.mxu1 %v3346_v25  ;;  %v3436_v25 = vld [vmem:[#allocation9 + $0x6a4] ss:$8 sps:$4 sm:$0xff]  }
 0x285   :  { %2346 = vmatprep.subr.bf16.mxu1 %v3354_v53  ;;  %v3431_v53 = vld [vmem:[#allocation9 + $0x7b0] ss:$8 sps:$4 sm:$0xff]  }
 0x286   :  { %2306 = vmatpush2.bf16.msra.mxu0 %v3349_v54  ;;  %v3439_v54 = vld [vmem:[#allocation9 + $0x7a4] ss:$8 sps:$4 sm:$0xff]  }
 0x287   :  { %2357 = vmatprep.subr.bf16.mxu0 %v3357_v56  ;;  %v3442_v56 = vld [vmem:[#allocation9 + $0x694] ss:$8 sps:$4 sm:$0xff]  }
 0x288   :  { %2347 = vmatpush2.bf16.msra.mxu1 %v3352_v58  ;;  %v3437_v58 = vld [vmem:[#allocation9 + $0x7a0] ss:$8 sps:$4 sm:$0xff]  }
 0x289   :  { %2308 = vmatmul.mubr.bf16.vlgmr.msra.gmra.mxu0 %v3719_v33  ;;  %2398 = vmatprep.subr.bf16.mxu1 %v3361_v59  ;;  %v3371_v33 = vld [vmem:[#allocation9 + $0x750] ss:$8 sps:$4 sm:$0xff]   ;;  %v3445_v59 = vld [vmem:[#allocation9 + $0x794] ss:$8 sps:$4 sm:$0xff]  }
 0x28a   :  { %2358 = vmatpush1.bf16.msra.mxu0 %v3355_v60  ;;  %2389 = vmatprep.mubr.bf16.mxu0 %v810_v24  ;;  %v3440_v60 = vld [vmem:[#allocation9 + $0x690] ss:$8 sps:$4 sm:$0xff]   ;;  %v3448_v24 = vld [vmem:[#allocation9 + $0x684] ss:$8 sps:$4 sm:$0xff]  }
 0x28b   :  { %2349 = vmatmul.mubr.bf16.vlgmr.msra.gmra.mxu1 %v811_v63  ;;  %2359 = vmatprep.subr.bf16.mxu0 %v3364_v61  ;;  %v3443_v61 = vld [vmem:[#allocation9 + $0x790] ss:$8 sps:$4 sm:$0xff]   ;;  %v3446_v63 = vld [vmem:[#allocation9 + $0x680] ss:$8 sps:$4 sm:$0xff]  }
 0x28c   :  { %2399 = vmatpush1.bf16.msra.mxu1 %v3359_v62  ;;  %2430 = vmatprep.mubr.bf16.mxu1 %v814_v0  ;;  %v3451_v62 = vld [vmem:[#allocation9 + $0x784] ss:$8 sps:$4 sm:$0xff]   ;;  %v3449_v0 = vld [vmem:[#allocation9 + $0x780] ss:$8 sps:$4 sm:$0xff]  }
 0x28d   :  { %2400 = vmatprep.subr.bf16.mxu1 %v3367_v34  ;;  %v703_v34 = vld [vmem:[%s3765_s6] sm:$0x3] }
 0x28e   :  { %2360 = vmatpush1.bf16.msra.mxu0 %v3362_v1  ;;  %v708_v1 = vrot.slane %v703_v34, %v240_v43 }
 0x28f   :  { %2361 = vmatprep.subr.bf16.mxu0 %v3370_v2  ;;  %v712_v2 = vrot.slane %v703_v34, %v244_v45  ;;  %v3453_v45 = vld [vmem:[#allocation11 + $0x38] sm:$0xff]  }
 0x290   :  { %2401 = vmatpush1.bf16.msra.mxu1 %v3365_v57 }
 0x291   :  { %2402 = vmatprep.subr.bf16.mxu1 %v3373_v3  ;;  %v812_v3 = vcombine.high %v3726_v39, %v3726_v39 }
 0x292   :  { %2362 = vmatpush1.bf16.msra.mxu0 %v3368_v4 }
 0x293   :  { %2363 = vmatprep.subr.bf16.mxu0 %v3376_v5 }
 0x294   :  { %2403 = vmatpush1.bf16.msra.mxu1 %v3371_v33 }
 0x295   :  { %2404 = vmatprep.subr.bf16.mxu1 %v3379_v6 }
 0x296   :  { %2364 = vmatpush1.bf16.msra.mxu0 %v3374_v7 }
 0x297   :  { %2365 = vmatprep.subr.bf16.mxu0 %v3382_v8 }
 0x298   :  { %2405 = vmatpush1.bf16.msra.mxu1 %v3377_v9 }
 0x299   :  { %2406 = vmatprep.subr.bf16.mxu1 %v3385_v10 }
 0x29a   :  { %2366 = vmatpush1.bf16.msra.mxu0 %v3380_v11 }
 0x29b   :  { %2367 = vmatprep.subr.bf16.mxu0 %v3388_v12 }
 0x29c   :  { %2407 = vmatpush1.bf16.msra.mxu1 %v3383_v13  ;;  %v3454_v13 = vld [vmem:[#allocation11 + $0x70] sm:$0xff]  }
 0x29d   :  { %2408 = vmatprep.subr.bf16.mxu1 %v3391_v14  ;;  %v3455_v14 = vld [vmem:[#allocation11 + $0x30] sm:$0xff]  }
 0x29e   :  { %2368 = vmatpush1.bf16.msra.mxu0 %v3386_v15  ;;  %v3457_v15 = vld [vmem:[#allocation11 + $0x28] sm:$0xff]  }
 0x29f   :  { %2369 = vmatprep.subr.bf16.mxu0 %v3394_v16  ;;  %v3458_v16 = vld [vmem:[#allocation11 + $0x60] sm:$0xff]  }
 0x2a0   :  { %2409 = vmatpush1.bf16.msra.mxu1 %v3389_v17  ;;  %v3459_v17 = vld [vmem:[#allocation11 + $0x20] sm:$0xff]  }
 0x2a1   :  { %2410 = vmatprep.subr.bf16.mxu1 %v3397_v18  ;;  %v3460_v18 = vld [vmem:[#allocation11 + $0x58] sm:$0xff]  }
 0x2a2   :  { %2370 = vmatpush1.bf16.msra.mxu0 %v3392_v19  ;;  %v3461_v19 = vld [vmem:[#allocation11 + $0x18] sm:$0xff]  }
 0x2a3   :  { %2371 = vmatprep.subr.bf16.mxu0 %v3400_v20  ;;  %v3462_v20 = vld [vmem:[#allocation11 + $0x50] sm:$0xff]  }
 0x2a4   :  { %2411 = vmatpush1.bf16.msra.mxu1 %v3395_v21 }
 0x2a5   :  { %2412 = vmatprep.subr.bf16.mxu1 %v3403_v22  ;;  %v3463_v22 = vld [vmem:[#allocation11 + $0x10] sm:$0xff]  }
 0x2a6   :  { %2372 = vmatpush1.bf16.msra.mxu0 %v3398_v23 }
 0x2a7   :  { %2373 = vmatprep.subr.bf16.mxu0 %v3406_v26 }
 0x2a8   :  { %2413 = vmatpush1.bf16.msra.mxu1 %v3401_v27 }
 0x2a9   :  { %2414 = vmatprep.subr.bf16.mxu1 %v3409_v28 }
 0x2aa   :  { %2374 = vmatpush2.bf16.msra.mxu0 %v3404_v29 }
 0x2ab   :  { %2375 = vmatprep.subr.bf16.mxu0 %v3412_v30  ;;  %v3464_v30 = vld [vmem:[#allocation11 + $0x48] sm:$0xff]  }
 0x2ac   :  { %2415 = vmatpush2.bf16.msra.mxu1 %v3407_v31 }
 0x2ad   :  { %2416 = vmatprep.subr.bf16.mxu1 %v3415_v32 }
 0x2ae   :  { %2376 = vmatpush2.bf16.msra.mxu0 %v3410_v35  ;;  %v3465_v35 = vld [vmem:[#allocation11 + $0x8] sm:$0xff]  }
 0x2af   :  { %2377 = vmatprep.subr.bf16.mxu0 %v3418_v36 }
 0x2b0   :  { %2417 = vmatpush2.bf16.msra.mxu1 %v3413_v37 }
 0x2b1   :  { %2418 = vmatprep.subr.bf16.mxu1 %v3421_v38 }
 0x2b2   :  { %2378 = vmatpush2.bf16.msra.mxu0 %v3416_v40  ;;  %v3466_v40 = vld [vmem:[#allocation11 + $0x40] sm:$0xff]  }
 0x2b3   :  { %2379 = vmatprep.subr.bf16.mxu0 %v3424_v44 }
 0x2b4   :  { %2419 = vmatpush2.bf16.msra.mxu1 %v3419_v46  ;;  %v3467_v46 = vld [vmem:[#allocation11] sm:$0xff]  }
 0x2b5   :  { %2420 = vmatprep.subr.bf16.mxu1 %v3427_v47 }
 0x2b6   :  { %2380 = vmatpush2.bf16.msra.mxu0 %v3422_v48 }
 0x2b7   :  { %2381 = vmatprep.subr.bf16.mxu0 %v3430_v49 }
 0x2b8   :  { %2421 = vmatpush2.bf16.msra.mxu1 %v3425_v50 }
 0x2b9   :  { %2422 = vmatprep.subr.bf16.mxu1 %v3433_v51 }
 0x2ba   :  { %2382 = vmatpush2.bf16.msra.mxu0 %v3428_v52 }
 0x2bb   :  { %2383 = vmatprep.subr.bf16.mxu0 %v3436_v25 }
 0x2bc   :  { %2423 = vmatpush2.bf16.msra.mxu1 %v3431_v53 }
 0x2bd   :  { %2424 = vmatprep.subr.bf16.mxu1 %v3439_v54 }
 0x2be   :  { %2384 = vmatpush2.bf16.msra.mxu0 %v3434_v55 }
 0x2bf   :  { %2385 = vmatprep.subr.bf16.mxu0 %v3442_v56 }
 0x2c0   :  { %2425 = vmatpush2.bf16.msra.mxu1 %v3437_v58 }
 0x2c1   :  { %2426 = vmatprep.subr.bf16.mxu1 %v3445_v59 }
 0x2c2   :  { %2386 = vmatpush2.bf16.msra.mxu0 %v3440_v60 }
 0x2c3   :  { %2387 = vmatprep.subr.bf16.mxu0 %v3448_v24 }
 0x2c4   :  { %2427 = vmatpush2.bf16.msra.mxu1 %v3443_v61 }
 0x2c5   :  { %2428 = vmatprep.subr.bf16.mxu1 %v3451_v62 }
 0x2c6   :  { %2388 = vmatpush2.bf16.msra.mxu0 %v3446_v63 }
 0x2c7   :  { %2974 = vmatprep.subr.bf16.mxu0 %v3452_v42 }
 0x2c8   :  { %2429 = vmatpush2.bf16.msra.mxu1 %v3449_v0 }
 0x2c9   :  { %2390 = vmatmul.mubr.bf16.vlgmr.msra.gmra.mxu0 %v3726_v39  ;;  %v2145_v57 = vpop.f32.mrf.mxu0  ;;  %v3456_v39 = vld [vmem:[#allocation11 + $0x68] sm:$0xff]  }
 0x2ca   :  { %v2146_v4 = vadd.f32 %v2145_v57, %v708_v1  ;;  %2975 = vmatpush3.bf16.msra.mxu0 %v3453_v45 }
 0x2cb   :  { %2431 = vmatmul.mubr.bf16.vlgmr.msra.gmra.mxu1 %v812_v3  ;;  %v2147_v5 = vpop.f32.mrf.mxu0  ;;  %v2186_v33 = vpop.f32.mrf.mxu1  ;;  %2976 = vmatprep.subr.bf16.mxu0 %v3454_v13 }
 0x2cc   :  { %v2148_v6 = vadd.f32 %v2147_v5, %v712_v2  ;;  %v2187_v7 = vadd.f32 %v2186_v33, %v2146_v4 }
 0x2cd   :  { %v2149_v8 = vpop.f32.mrf.mxu0  ;;  %v2188_v9 = vpop.f32.mrf.mxu1 }
 0x2ce   :  { %v2189_v10 = vadd.f32 %v2188_v9, %v2148_v6  ;;  %2977 = vmatpush3.bf16.msra.mxu0 %v3455_v14  ;;  %v2619_v9 = vand.u32 127, %v238_v41 }
 0x2cf   :  { %v2150_v43 = vpop.f32.mrf.mxu0  ;;  %v2190_v11 = vpop.f32.mrf.mxu1  ;;  %2978 = vmatprep.subr.bf16.mxu0 %v3456_v39 }
 0x2d0   :  { %vm2620_vm1 = vcmp.lt.s32.totalorder %v2619_v9, 26 }
 0x2d1   :  { %v2191_v12 = vpop.f32.mrf.mxu1 }
 0x2d2   :  { %2979 = vmatpush3.bf16.msra.mxu0 %v3457_v15 }
 0x2d3   :  { %2980 = vmatprep.subr.bf16.mxu0 %v3458_v16 }
 0x2d6   :  { %2981 = vmatpush3.bf16.msra.mxu0 %v3459_v17 }
 0x2d7   :  { %2982 = vmatprep.subr.bf16.mxu0 %v3460_v18 }
 0x2da   :  { %2983 = vmatpush3.bf16.msra.mxu0 %v3461_v19 }
 0x2db   :  { %2984 = vmatprep.subr.bf16.mxu0 %v3462_v20 }
 0x2de   :  { %2985 = vmatpush3.bf16.msra.mxu0 %v3463_v22 }
 0x2df   :  { %2986 = vmatprep.subr.bf16.mxu0 %v3464_v30 }
 0x2e2   :  { %2987 = vmatpush3.bf16.msra.mxu0 %v3465_v35 }
 0x2e3   :  { %2988 = vmatprep.subr.bf16.mxu0 %v3466_v40 }
 0x2e6   :  { %2989 = vmatpush3.bf16.msra.mxu0 %v3467_v46 }
 0x309   :  { %v2227_v21 = vpop.f32.mrf.mxu0 }
 0x30a   :  { %v2228_v23 = vadd.f32 %v2227_v21, %v2187_v7  ;;  %v3609_v7 = vmov 127  }
 0x30b   :  { %v2229_v26 = vpop.f32.mrf.mxu0  ;;  %v2268_v27 = vpop.f32.mrf.mxu1  ;;  %3033 = vset.pattern.permute.xlu0 %v3609_v7 }
 0x30c   :  { %v2230_v28 = vadd.f32 %v2229_v26, %v2189_v10  ;;  %v2269_v29 = vadd.f32 %v2268_v27, %v2228_v23  ;;  %v2948_v10 = vld [vmem:[%s3767_s8] ss:$0 sm:$0xff] }
 0x30d   :  { %v2231_v31 = vpop.f32.mrf.mxu0  ;;  %v2270_v32 = vpop.f32.mrf.mxu1 }
 0x30e   :  { %v2271_v36 = vadd.f32 %v2270_v32, %v2230_v28 }
 0x30f   :  { %v2232_v37 = vpop.f32.mrf.mxu0  ;;  %v2272_v38 = vpop.f32.mrf.mxu1 }
 0x311   :  { %v2273_v44 = vpop.f32.mrf.mxu1 }
 0x349   :  { %v2309_v47 = vpop.f32.mrf.mxu0 }
 0x34a   :  { %v2310_v54 = vadd.f32 %v2309_v47, %v2269_v29 }
 0x34b   :  { %v2311_v48 = vpop.f32.mrf.mxu0  ;;  %v2350_v49 = vpop.f32.mrf.mxu1 }
 0x34c   :  { %v2312_v55 = vadd.f32 %v2311_v48, %v2271_v36  ;;  %v2351_v56 = vadd.f32 %v2350_v49, %v2310_v54 }
 0x34d   :  { %v2313_v50 = vpop.f32.mrf.mxu0  ;;  %v2352_v51 = vpop.f32.mrf.mxu1 }
 0x34e   :  { %v2353_v59 = vadd.f32 %v2352_v51, %v2312_v55 }
 0x34f   :  { %v2314_v52 = vpop.f32.mrf.mxu0  ;;  %v2354_v25 = vpop.f32.mrf.mxu1 }
 0x351   :  { %v2355_v53 = vpop.f32.mrf.mxu1 }
 0x389   :  { %v2391_v58 = vpop.f32.mrf.mxu0 }
 0x38a   :  { %v2392_v60 = vadd.f32 %v2391_v58, %v2351_v56 }
 0x38b   :  { %v2393_v24 = vpop.f32.mrf.mxu0  ;;  %v2432_v61 = vpop.f32.mrf.mxu1 }
 0x38c   :  { %v2394_v62 = vadd.f32 %v2393_v24, %v2353_v59  ;;  %v2433_v63 = vadd.f32 %v2432_v61, %v2392_v60 }
 0x38d   :  { %v2395_v34 = vpop.f32.mrf.mxu0  ;;  %v2434_v0 = vpop.f32.mrf.mxu1 }
 0x38e   :  { %v2435_v1 = vadd.f32 %v2434_v0, %v2394_v62  ;;  %v2439_v2 = vmax.f32 %v2433_v63, 0.0 }
 0x38f   :  { %v2396_v57 = vpop.f32.mrf.mxu0  ;;  %v2436_v3 = vpop.f32.mrf.mxu1 }
 0x390   :  { %v2440_v4 = vmax.f32 %v2435_v1, 0.0  ;;  %v2441_v6 = vpack.c.bf16 %v2439_v2, %v2439_v2 }
 0x391   :  { %v2437_v5 = vpop.f32.mrf.mxu1 }
 0x392   :  { %v2442_v33 = vpack.c.bf16 %v2440_v4, %v2440_v4 }
 0x394   :  { %2610 = vmatprep.mubr.bf16.mxu0 %v2442_v33 }
 0x395   :  { %2611 = vmatmul.mubr.bf16.vlgmr.msra.gmra.mxu0 %v2441_v6 }
 0x455   :  { %v2990_v8 = vpop.f32.mrf.mxu0 }
 0x457   :  { %v2991_v43 = vpop.f32.mrf.mxu0 }
 0x458   :  { %v2992_v11 = vadd.f32 %v2991_v43, %v2990_v8 }
 0x459   :  { %v2993_v12 = vpop.f32.mrf.mxu0 }
 0x45a   :  { %v2613_v42 = vadd.f32 %v2992_v11, %v2948_v10 }
 0x45b   :  { %v2994_v45 = vpop.f32.mrf.mxu0 }
 0x45c   :  { %v2621_v13 = vsel %vm2620_vm1, %v2613_v42, 0.0 }
 0x45d   :  { %v2623_v14 = vsel %vm2622_vm2, %v2621_v13, 0.0 }
 0x45e   :  { %2624 = vadd.xlane.f32.xlu0 %v2623_v14 }
 0x474   :  { %2636 = vperm.xlu0 %3033, %v2613_v42  }
 0x4e7   :  { %v2625_v39 = vpop.xlane.xlu0 %2624 }
 0x4e8   :  { %v2626_v15 = vrot.slane %v2625_v39, 4 }
 0x4ea   :  { %v2627_v16 = vadd.f32 %v2626_v15, %v2625_v39 }
 0x4ec   :  { %v2628_v41 = vrot.slane %v2627_v16, 2 }
 0x4ee   :  { %v2629_v17 = vadd.f32 %v2628_v41, %v2627_v16 }
 0x4ef   :  { %v2637_v20 = vpop.permute.xlu0 %2636 }
 0x4f0   :  { %v2630_v18 = vrot.slane %v2629_v17, 1  ;;  %v2639_v21 = vadd.f32 %v2637_v20, %v2613_v42 }
 0x4f2   :  { %v2631_v19 = vadd.f32 %v2630_v18, %v2629_v17 }
 0x4f4   :  { %3016 = vpush %v2631_v19 }
 0x525   :  { %s3017_s8 = spop %3016 }
 0x526   :  { %s2633_s17 = smul.f32 0.01923077, %s3017_s8 }
 0x528   :  { %v2640_v22 = vstv %s2633_s17 }
 0x529   :  { %v2641_v23 = vsub.f32 %v2639_v21, %v2640_v22 }
 0x52b   :  { %v2642_v26 = vsel %vm2620_vm1, %v2641_v23, 0.0 }
 0x52c   :  { %2643 = vst [vmem:[#allocation12] sm:$0x3] %v2642_v26 }
 0x52d   :  { %3579 = shalt.err (!%p3576_p1)
}
 0x52e   :  { %2653 = dma.vmem_to_hbm [thread:$0]  %s2651_s19, 32, %s3768_s9, [#allocation5]  }
 0x52f   :  { %3594 = dma.done.wait [#allocation5], 32  }
 0x530   :  { %3595 = vsyncadd [#allocation5], 4294967264 }
 0x531   :  { %2657 = vsyncpa [#allocation4], 1 }
 0x532   :  { %2658 = vsyncpa [#allocation7], 1 }
 0x533   :  { %2659 = vsyncpa [#allocation10], 1 }
 0x534   :  { %2660 = vsyncpa [#allocation5], 1 }

</bundles_post_ra>
